<compile_context>
chip_gen: v6e
topology: v6e:2x2x1
jax: 0.10.0
libtpu: 0.0.40
codegen_flags: <defaults>
</compile_context>

<pallas_src>
import jax
import jax.numpy as jnp
from jax import lax
from jax.experimental import pallas as pl
from jax.experimental.pallas import tpu as pltpu

EPS = 1e-5


# ---------------------------------------------------------------------------
# Fused block kernel (one grid step == one batch image).
# ---------------------------------------------------------------------------
def _make_kernel(*, stride, h, w, cin, cout, hout, wout, has_proj):
    WS = wout + 2          # row stride of every padded / "wide" flat buffer
    Lw = hout * WS         # wide pixel count (junk columns masked / discarded)

    def kernel(*refs):
        # ---- unpack refs (layout depends on stride / shortcut flavour) ------
        if stride == 1:
            x_ref = refs[0]
            w1_ref, b1_ref, w2_ref, b2_ref = refs[1:5]
            idx = 5
        else:
            planes = refs[0:4]          # phase plane (py, px) -> refs[py*2+px]
            w1_ref, b1_ref, w2_ref, b2_ref = refs[4:8]
            idx = 8
        if has_proj:
            ws_ref, bs_ref = refs[idx:idx + 2]
            idx += 2
        out_ref = refs[idx]
        if stride == 1:
            p1, p2 = refs[idx + 1:idx + 3]
        else:
            p2 = refs[idx + 1]

        # ---- padded conv1 input (stride-1 only; stride-2 planes arrive
        #      pre-padded & pre-split from the wrapper) ------------------------
        if stride == 1:
            zeros2 = jnp.zeros((cin, 2), jnp.bfloat16)
            # top padding row + left pad of first interior row
            p1[:, 0:WS + 1] = jnp.zeros((cin, WS + 1), jnp.bfloat16)
            # bottom padding + guard rows
            p1[:, (h + 1) * WS + 1:] = jnp.zeros((cin, 2 * WS - 1), jnp.bfloat16)
            for r in range(h):
                row = x_ref[0, :, r * w:(r + 1) * w].astype(jnp.bfloat16)  # cast once
                # image row + its right pad + next row's left pad, one store
                p1[:, (1 + r) * WS + 1:(2 + r) * WS + 1] = jnp.concatenate(
                    [row, zeros2], axis=1)

        def conv1_tap(ky, kx):
            if stride == 1:
                o = ky * WS + kx
                return p1[:, o:o + Lw]
            pi = (ky % 2) * 2 + (kx % 2)
            o = (ky // 2) * WS + (kx // 2)
            return planes[pi][0, :, o:o + Lw]

        def conv_accumulate(w_ref, tap_fn):
            acc = None
            for ky in range(3):
                for kx in range(3):
                    d = jnp.dot(w_ref[ky * 3 + kx], tap_fn(ky, kx),
                                preferred_element_type=jnp.float32)
                    acc = d if acc is None else acc + d
            return acc

        # ---- conv1 + BN1(folded) + ReLU: 9 accumulating bf16 MXU dots --------
        acc1 = conv_accumulate(w1_ref, conv1_tap)                 # (cout, Lw) f32
        lane = lax.broadcasted_iota(jnp.int32, (1, Lw), 1)
        valid = (lane % WS) < wout                                # mask junk cols
        y1 = jnp.where(valid, jnp.maximum(acc1 + b1_ref[...], 0.0), 0.0)

        # ---- conv2's padded input: thin pad rows + ONE masked wide store -----
        p2[:, 0:WS + 1] = jnp.zeros((cout, WS + 1), jnp.bfloat16)
        p2[:, (hout + 1) * WS + 1:] = jnp.zeros((cout, 2 * WS - 1), jnp.bfloat16)
        p2[:, WS + 1:WS + 1 + Lw] = y1.astype(jnp.bfloat16)

        # ---- conv2 + BN2(folded) ---------------------------------------------
        acc2 = conv_accumulate(w2_ref, lambda ky, kx:
                               p2[:, ky * WS + kx:ky * WS + kx + Lw])
        z = acc2 + b2_ref[...]

        # ---- projection shortcut (1x1 conv, center tap of the input) ---------
        if has_proj:
            if stride == 1:
                ctr = p1[:, WS + 1:WS + 1 + Lw]
            else:
                ctr = planes[3][0, :, 0:Lw]                       # plane (1,1)
            z = z + jnp.dot(ws_ref[...], ctr,
                            preferred_element_type=jnp.float32) + bs_ref[...]

        # ---- identity residual (f32 from the input ref) + ReLU + store -------
        for r in range(hout):
            row = z[:, r * WS:r * WS + wout]
            if not has_proj:
                row = row + x_ref[0, :, r * w:(r + 1) * w]        # f32 residual
            out_ref[0, :, r * wout:(r + 1) * wout] = (
                jnp.maximum(row, 0.0).astype(out_ref.dtype))

    return kernel


# ---------------------------------------------------------------------------
# Wrapper: fold BN into weights/biases, build specs, call the fused kernel.
# ---------------------------------------------------------------------------
def _fold_bn(conv_bias, gamma, beta, mean, var, eps=EPS):
    scale = gamma / jnp.sqrt(var + eps)
    bias = (conv_bias - mean) * scale + beta
    return scale, bias


def _vmem_limit_bytes():
    # Per-generation budget (v5e/v6e: 128 MiB physical, v7x: 64 MiB).  This
    # kernel needs far less; the limit just has to exceed actual usage.
    try:
        cap = int(pltpu.get_tpu_info().vmem_capacity_bytes)
    except Exception:
        cap = 64 * 1024 * 1024
    return min(64 * 1024 * 1024, (3 * cap) // 4)


def enhanced_block_forward(x_nchw, params, stride):
    x = x_nchw.astype(jnp.float32)                      # stays NCHW throughout
    n, cin, h, w = x.shape
    cout = params["conv1_w"].shape[-1]
    hout = (h + 2 - 3) // stride + 1
    wout = (w + 2 - 3) // stride + 1
    has_proj = params.get("sc_w") is not None
    if stride != 1 and not has_proj:
        raise ValueError("stride != 1 requires a projection shortcut")
    WS = wout + 2

    # Fold BN (eval mode, running stats) into conv weights / biases.
    s1, b1 = _fold_bn(params["conv1_b"], *params["bn1"])
    s2, b2 = _fold_bn(params["conv2_b"], *params["bn2"])
    # per-tap (cout, cin) weights, channel-major to match the NCHW data layout
    w1k = jnp.transpose(params["conv1_w"] * s1, (0, 1, 3, 2)) \
             .reshape(9, cout, cin).astype(jnp.bfloat16)
    w2k = jnp.transpose(params["conv2_w"] * s2, (0, 1, 3, 2)) \
             .reshape(9, cout, cout).astype(jnp.bfloat16)

    inputs, in_specs = [], []
    if stride == 1:
        inputs.append(x.reshape(n, cin, h * w))         # free metadata reshape
        in_specs.append(pl.BlockSpec((1, cin, h * w), lambda b: (b, 0, 0)))
    else:
        # One-time 2x2 phase-plane split (+halo, bf16) so every in-kernel tap
        # is a plain contiguous slice.  Only downsampling blocks pay this pass.
        # TODO(synk): push this split into the HBM->VMEM DMA (strided copy).
        xp = jnp.pad(x, ((0, 0), (0, 0), (1, 5), (1, 5))).astype(jnp.bfloat16)
        hpp = hout + 2
        for py in range(2):
            for px in range(2):
                pln = xp[:, :, py:py + 2 * hpp:2, px:px + 2 * WS:2]
                inputs.append(pln.reshape(n, cin, hpp * WS))
                in_specs.append(
                    pl.BlockSpec((1, cin, hpp * WS), lambda b: (b, 0, 0)))

    inputs += [w1k, b1.reshape(cout, 1), w2k, b2.reshape(cout, 1)]
    in_specs += [
        pl.BlockSpec((9, cout, cin), lambda b: (0, 0, 0)),
        pl.BlockSpec((cout, 1), lambda b: (0, 0)),
        pl.BlockSpec((9, cout, cout), lambda b: (0, 0, 0)),
        pl.BlockSpec((cout, 1), lambda b: (0, 0)),
    ]
    if has_proj:
        ss, bs = _fold_bn(params["sc_b"], *params["bn_sc"])
        wsk = jnp.transpose(params["sc_w"] * ss, (1, 0)).astype(jnp.bfloat16)
        inputs += [wsk, bs.reshape(cout, 1)]
        in_specs += [pl.BlockSpec((cout, cin), lambda b: (0, 0)),
                     pl.BlockSpec((cout, 1), lambda b: (0, 0))]

    scratch_shapes = []
    if stride == 1:
        scratch_shapes.append(pltpu.VMEM((cin, (h + 3) * WS), jnp.bfloat16))
    scratch_shapes.append(pltpu.VMEM((cout, (hout + 3) * WS), jnp.bfloat16))

    kernel = _make_kernel(stride=stride, h=h, w=w, cin=cin, cout=cout,
                          hout=hout, wout=wout, has_proj=has_proj)

    flops = 2 * n * hout * wout * cout * (9 * cin + 9 * cout +
                                          (cin if has_proj else 0))
    bytes_accessed = (4 * n * cin * h * w + 4 * n * cout * hout * wout
                      + 2 * (w1k.size + w2k.size +
                             (cin * cout if has_proj else 0)) + 4 * 3 * cout)

    # TODO(synk): flatten (batch, row-blocks) into the grid for deeper
    #             pipelining / better megacore balance at small batch sizes.
    out = pl.pallas_call(
        kernel,
        out_shape=jax.ShapeDtypeStruct((n, cout, hout * wout), jnp.float32),
        grid_spec=pltpu.PrefetchScalarGridSpec(
            num_scalar_prefetch=0,
            grid=(n,),
            in_specs=in_specs,
            out_specs=pl.BlockSpec((1, cout, hout * wout), lambda b: (b, 0, 0)),
            scratch_shapes=scratch_shapes,
        ),
        compiler_params=pltpu.CompilerParams(
            dimension_semantics=("parallel",),
            vmem_limit_bytes=_vmem_limit_bytes()),
        cost_estimate=pl.CostEstimate(flops=int(flops), transcendentals=0,
                                      bytes_accessed=int(bytes_accessed)),
    )(*inputs)

    return out.reshape(n, cout, hout, wout)              # free metadata reshape


# ---------------------------------------------------------------------------
# Pure-JAX reference (for correctness check only).
# ---------------------------------------------------------------------------
def reference_forward(x_nchw, params, stride):
    x = jnp.transpose(x_nchw, (0, 2, 3, 1)).astype(jnp.float32)

    def conv(a, wgt, b, s, pad):
        y = lax.conv_general_dilated(a, wgt, (s, s), pad,
                                     dimension_numbers=("NHWC", "HWIO", "NHWC"))
        return y + b

    def bn(a, gamma, beta, mean, var):
        return (a - mean) / jnp.sqrt(var + EPS) * gamma + beta

    out = jax.nn.relu(bn(conv(x, params["conv1_w"], params["conv1_b"], stride,
                              [(1, 1), (1, 1)]), *params["bn1"]))
    out = bn(conv(out, params["conv2_w"], params["conv2_b"], 1,
                  [(1, 1), (1, 1)]), *params["bn2"])
    if params.get("sc_w") is not None:
        sw = params["sc_w"][None, None]                           # (1,1,Cin,Cout)
        short = bn(conv(x, sw, params["sc_b"], stride, [(0, 0), (0, 0)]),
                   *params["bn_sc"])
    else:
        short = x
    out = jax.nn.relu(out + short)
    return jnp.transpose(out, (0, 3, 1, 2))


def init_params(key, cin, cout, stride):
    ks = jax.random.split(key, 10)
    p = {
        "conv1_w": 0.1 * jax.random.normal(ks[0], (3, 3, cin, cout), jnp.float32),
        "conv1_b": 0.1 * jax.random.normal(ks[1], (cout,), jnp.float32),
        "bn1": (1.0 + 0.1 * jax.random.normal(ks[2], (cout,), jnp.float32),
                0.1 * jax.random.normal(ks[3], (cout,), jnp.float32),
                0.1 * jax.random.normal(ks[4], (cout,), jnp.float32),
                0.5 + jax.random.uniform(ks[5], (cout,), jnp.float32)),
        "conv2_w": 0.1 * jax.random.normal(ks[6], (3, 3, cout, cout), jnp.float32),
        "conv2_b": 0.1 * jax.random.normal(ks[7], (cout,), jnp.float32),
        "bn2": (1.0 + 0.1 * jax.random.normal(ks[8], (cout,), jnp.float32),
                0.1 * jax.random.normal(ks[9], (cout,), jnp.float32),
                0.05 * jnp.ones((cout,), jnp.float32),
                0.8 * jnp.ones((cout,), jnp.float32)),
    }
    if stride != 1 or cin != cout:
        k2 = jax.random.split(jax.random.PRNGKey(123), 4)
        p["sc_w"] = 0.1 * jax.random.normal(k2[0], (cin, cout), jnp.float32)
        p["sc_b"] = 0.1 * jax.random.normal(k2[1], (cout,), jnp.float32)
        p["bn_sc"] = (1.0 + 0.1 * jax.random.normal(k2[2], (cout,), jnp.float32),
                      0.1 * jax.random.normal(k2[3], (cout,), jnp.float32),
                      -0.05 * jnp.ones((cout,), jnp.float32),
                      1.2 * jnp.ones((cout,), jnp.float32))
    else:
        p["sc_w"] = None
    return p


if __name__ == "__main__":
    def run_case(name, n, cin, cout, hw, stride, seed):
        kx_, kp = jax.random.split(jax.random.PRNGKey(seed))
        x = jax.random.normal(kx_, (n, cin, hw, hw), jnp.float32)   # PyTorch NCHW
        params = init_params(kp, cin, cout, stride)
        out = jax.block_until_ready(enhanced_block_forward(x, params, stride))
        ref = jax.block_until_ready(reference_forward(x, params, stride))
        hout = (hw - 1) // stride + 1
        assert out.shape == (n, cout, hout, hout), (name, out.shape)
        err = float(jnp.max(jnp.abs(out - ref)))
        tol = 3e-2 + 3e-2 * float(jnp.max(jnp.abs(ref)))  # bf16 MXU, f32 accumulate
        assert err < tol, (name, err, tol)
        return err

    run_case("projection_stride1", 2, 4, 8, 16, 1, 0)   # Cin != Cout -> 1x1 projection
    run_case("identity_stride1", 2, 8, 8, 16, 1, 1)     # Cin == Cout, stride 1 -> identity
    run_case("projection_stride2", 2, 4, 8, 16, 2, 2)   # downsampling block (stride 2)
    print("KERNEL_OK")
</pallas_src>

<mosaic_0001>
module attributes {stable_mosaic.version = 11 : i64} {
  func.func @kernel(%arg0: i32, %arg1: memref<1x4x256xf32, #tpu.memory_space<vmem>>, %arg2: memref<9x8x4xbf16, #tpu.memory_space<vmem>>, %arg3: memref<8x1xf32, #tpu.memory_space<vmem>>, %arg4: memref<9x8x8xbf16, #tpu.memory_space<vmem>>, %arg5: memref<8x1xf32, #tpu.memory_space<vmem>>, %arg6: memref<8x4xbf16, #tpu.memory_space<vmem>>, %arg7: memref<8x1xf32, #tpu.memory_space<vmem>>, %arg8: memref<1x8x256xf32, #tpu.memory_space<vmem>>, %arg9: memref<4x342xbf16, #tpu.memory_space<vmem>>, %arg10: memref<8x342xbf16, #tpu.memory_space<vmem>>) attributes {dimension_semantics = [#tpu.dimension_semantics<parallel>], iteration_bounds = array<i64: 2>, scalar_prefetch = 0 : i64, scratch_operands = 2 : i64, tpu.core_type = #tpu.core_type<tc>, window_params = [{transform_indices = @transform_0, window_bounds = array<i64: 1, 4, 256>}, {pipeline_mode = #tpu.pipeline_mode<synchronous>, transform_indices = @transform_1, window_bounds = array<i64: 9, 8, 4>}, {pipeline_mode = #tpu.pipeline_mode<synchronous>, transform_indices = @transform_2, window_bounds = array<i64: 8, 1>}, {pipeline_mode = #tpu.pipeline_mode<synchronous>, transform_indices = @transform_3, window_bounds = array<i64: 9, 8, 8>}, {pipeline_mode = #tpu.pipeline_mode<synchronous>, transform_indices = @transform_4, window_bounds = array<i64: 8, 1>}, {pipeline_mode = #tpu.pipeline_mode<synchronous>, transform_indices = @transform_5, window_bounds = array<i64: 8, 4>}, {pipeline_mode = #tpu.pipeline_mode<synchronous>, transform_indices = @transform_6, window_bounds = array<i64: 8, 1>}, {transform_indices = @transform_7, window_bounds = array<i64: 1, 8, 256>}]} {
    %cst = arith.constant 0.000000e+00 : bf16
    %0 = vector.broadcast %cst : bf16 to vector<4x2xbf16>
    %cst_0 = arith.constant 0.000000e+00 : bf16
    %1 = vector.broadcast %cst_0 : bf16 to vector<4x19xbf16>
    %c0 = arith.constant 0 : index
    %c0_1 = arith.constant 0 : index
    %2 = vector.load %arg9[%c0, %c0_1] : memref<4x342xbf16, #tpu.memory_space<vmem>>, vector<4x19xbf16>
    tpu.vector_store %arg9[%c0, %c0_1], %1 {strides = array<i32>} : memref<4x342xbf16, #tpu.memory_space<vmem>>, vector<4x19xbf16>,
    %cst_2 = arith.constant 0.000000e+00 : bf16
    %3 = vector.broadcast %cst_2 : bf16 to vector<4x35xbf16>
    %c0_3 = arith.constant 0 : index
    %c307 = arith.constant 307 : index
    %4 = vector.load %arg9[%c0_3, %c307] : memref<4x342xbf16, #tpu.memory_space<vmem>>, vector<4x35xbf16>
    tpu.vector_store %arg9[%c0_3, %c307], %3 {strides = array<i32>} : memref<4x342xbf16, #tpu.memory_space<vmem>>, vector<4x35xbf16>,
    %c0_4 = arith.constant 0 : index
    %c0_5 = arith.constant 0 : index
    %c0_6 = arith.constant 0 : index
    %5 = vector.load %arg1[%c0_4, %c0_5, %c0_6] : memref<1x4x256xf32, #tpu.memory_space<vmem>>, vector<1x4x16xf32>
    %6 = vector.shape_cast %5 : vector<1x4x16xf32> to vector<4x16xf32>
    %7 = arith.truncf %6 : vector<4x16xf32> to vector<4x16xbf16>
    %8 = tpu.concatenate %7, %0 in 1 : vector<4x16xbf16>, vector<4x2xbf16> -> vector<4x18xbf16>
    %c0_7 = arith.constant 0 : index
    %c19 = arith.constant 19 : index
    %9 = vector.load %arg9[%c0_7, %c19] : memref<4x342xbf16, #tpu.memory_space<vmem>>, vector<4x18xbf16>
    tpu.vector_store %arg9[%c0_7, %c19], %8 {strides = array<i32>} : memref<4x342xbf16, #tpu.memory_space<vmem>>, vector<4x18xbf16>,
    %c0_8 = arith.constant 0 : index
    %c0_9 = arith.constant 0 : index
    %c16 = arith.constant 16 : index
    %10 = vector.load %arg1[%c0_8, %c0_9, %c16] : memref<1x4x256xf32, #tpu.memory_space<vmem>>, vector<1x4x16xf32>
    %11 = vector.shape_cast %10 : vector<1x4x16xf32> to vector<4x16xf32>
    %12 = arith.truncf %11 : vector<4x16xf32> to vector<4x16xbf16>
    %13 = tpu.concatenate %12, %0 in 1 : vector<4x16xbf16>, vector<4x2xbf16> -> vector<4x18xbf16>
    %c0_10 = arith.constant 0 : index
    %c37 = arith.constant 37 : index
    %14 = vector.load %arg9[%c0_10, %c37] : memref<4x342xbf16, #tpu.memory_space<vmem>>, vector<4x18xbf16>
    tpu.vector_store %arg9[%c0_10, %c37], %13 {strides = array<i32>} : memref<4x342xbf16, #tpu.memory_space<vmem>>, vector<4x18xbf16>,
    %c0_11 = arith.constant 0 : index
    %c0_12 = arith.constant 0 : index
    %c32 = arith.constant 32 : index
    %15 = vector.load %arg1[%c0_11, %c0_12, %c32] : memref<1x4x256xf32, #tpu.memory_space<vmem>>, vector<1x4x16xf32>
    %16 = vector.shape_cast %15 : vector<1x4x16xf32> to vector<4x16xf32>
    %17 = arith.truncf %16 : vector<4x16xf32> to vector<4x16xbf16>
    %18 = tpu.concatenate %17, %0 in 1 : vector<4x16xbf16>, vector<4x2xbf16> -> vector<4x18xbf16>
    %c0_13 = arith.constant 0 : index
    %c55 = arith.constant 55 : index
    %19 = vector.load %arg9[%c0_13, %c55] : memref<4x342xbf16, #tpu.memory_space<vmem>>, vector<4x18xbf16>
    tpu.vector_store %arg9[%c0_13, %c55], %18 {strides = array<i32>} : memref<4x342xbf16, #tpu.memory_space<vmem>>, vector<4x18xbf16>,
    %c0_14 = arith.constant 0 : index
    %c0_15 = arith.constant 0 : index
    %c48 = arith.constant 48 : index
    %20 = vector.load %arg1[%c0_14, %c0_15, %c48] : memref<1x4x256xf32, #tpu.memory_space<vmem>>, vector<1x4x16xf32>
    %21 = vector.shape_cast %20 : vector<1x4x16xf32> to vector<4x16xf32>
    %22 = arith.truncf %21 : vector<4x16xf32> to vector<4x16xbf16>
    %23 = tpu.concatenate %22, %0 in 1 : vector<4x16xbf16>, vector<4x2xbf16> -> vector<4x18xbf16>
    %c0_16 = arith.constant 0 : index
    %c73 = arith.constant 73 : index
    %24 = vector.load %arg9[%c0_16, %c73] : memref<4x342xbf16, #tpu.memory_space<vmem>>, vector<4x18xbf16>
    tpu.vector_store %arg9[%c0_16, %c73], %23 {strides = array<i32>} : memref<4x342xbf16, #tpu.memory_space<vmem>>, vector<4x18xbf16>,
    %c0_17 = arith.constant 0 : index
    %c0_18 = arith.constant 0 : index
    %c64 = arith.constant 64 : index
    %25 = vector.load %arg1[%c0_17, %c0_18, %c64] : memref<1x4x256xf32, #tpu.memory_space<vmem>>, vector<1x4x16xf32>
    %26 = vector.shape_cast %25 : vector<1x4x16xf32> to vector<4x16xf32>
    %27 = arith.truncf %26 : vector<4x16xf32> to vector<4x16xbf16>
    %28 = tpu.concatenate %27, %0 in 1 : vector<4x16xbf16>, vector<4x2xbf16> -> vector<4x18xbf16>
    %c0_19 = arith.constant 0 : index
    %c91 = arith.constant 91 : index
    %29 = vector.load %arg9[%c0_19, %c91] : memref<4x342xbf16, #tpu.memory_space<vmem>>, vector<4x18xbf16>
    tpu.vector_store %arg9[%c0_19, %c91], %28 {strides = array<i32>} : memref<4x342xbf16, #tpu.memory_space<vmem>>, vector<4x18xbf16>,
    %c0_20 = arith.constant 0 : index
    %c0_21 = arith.constant 0 : index
    %c80 = arith.constant 80 : index
    %30 = vector.load %arg1[%c0_20, %c0_21, %c80] : memref<1x4x256xf32, #tpu.memory_space<vmem>>, vector<1x4x16xf32>
    %31 = vector.shape_cast %30 : vector<1x4x16xf32> to vector<4x16xf32>
    %32 = arith.truncf %31 : vector<4x16xf32> to vector<4x16xbf16>
    %33 = tpu.concatenate %32, %0 in 1 : vector<4x16xbf16>, vector<4x2xbf16> -> vector<4x18xbf16>
    %c0_22 = arith.constant 0 : index
    %c109 = arith.constant 109 : index
    %34 = vector.load %arg9[%c0_22, %c109] : memref<4x342xbf16, #tpu.memory_space<vmem>>, vector<4x18xbf16>
    tpu.vector_store %arg9[%c0_22, %c109], %33 {strides = array<i32>} : memref<4x342xbf16, #tpu.memory_space<vmem>>, vector<4x18xbf16>,
    %c0_23 = arith.constant 0 : index
    %c0_24 = arith.constant 0 : index
    %c96 = arith.constant 96 : index
    %35 = vector.load %arg1[%c0_23, %c0_24, %c96] : memref<1x4x256xf32, #tpu.memory_space<vmem>>, vector<1x4x16xf32>
    %36 = vector.shape_cast %35 : vector<1x4x16xf32> to vector<4x16xf32>
    %37 = arith.truncf %36 : vector<4x16xf32> to vector<4x16xbf16>
    %38 = tpu.concatenate %37, %0 in 1 : vector<4x16xbf16>, vector<4x2xbf16> -> vector<4x18xbf16>
    %c0_25 = arith.constant 0 : index
    %c127 = arith.constant 127 : index
    %39 = vector.load %arg9[%c0_25, %c127] : memref<4x342xbf16, #tpu.memory_space<vmem>>, vector<4x18xbf16>
    tpu.vector_store %arg9[%c0_25, %c127], %38 {strides = array<i32>} : memref<4x342xbf16, #tpu.memory_space<vmem>>, vector<4x18xbf16>,
    %c0_26 = arith.constant 0 : index
    %c0_27 = arith.constant 0 : index
    %c112 = arith.constant 112 : index
    %40 = vector.load %arg1[%c0_26, %c0_27, %c112] : memref<1x4x256xf32, #tpu.memory_space<vmem>>, vector<1x4x16xf32>
    %41 = vector.shape_cast %40 : vector<1x4x16xf32> to vector<4x16xf32>
    %42 = arith.truncf %41 : vector<4x16xf32> to vector<4x16xbf16>
    %43 = tpu.concatenate %42, %0 in 1 : vector<4x16xbf16>, vector<4x2xbf16> -> vector<4x18xbf16>
    %c0_28 = arith.constant 0 : index
    %c145 = arith.constant 145 : index
    %44 = vector.load %arg9[%c0_28, %c145] : memref<4x342xbf16, #tpu.memory_space<vmem>>, vector<4x18xbf16>
    tpu.vector_store %arg9[%c0_28, %c145], %43 {strides = array<i32>} : memref<4x342xbf16, #tpu.memory_space<vmem>>, vector<4x18xbf16>,
    %c0_29 = arith.constant 0 : index
    %c0_30 = arith.constant 0 : index
    %c128 = arith.constant 128 : index
    %45 = vector.load %arg1[%c0_29, %c0_30, %c128] : memref<1x4x256xf32, #tpu.memory_space<vmem>>, vector<1x4x16xf32>
    %46 = vector.shape_cast %45 : vector<1x4x16xf32> to vector<4x16xf32>
    %47 = arith.truncf %46 : vector<4x16xf32> to vector<4x16xbf16>
    %48 = tpu.concatenate %47, %0 in 1 : vector<4x16xbf16>, vector<4x2xbf16> -> vector<4x18xbf16>
    %c0_31 = arith.constant 0 : index
    %c163 = arith.constant 163 : index
    %49 = vector.load %arg9[%c0_31, %c163] : memref<4x342xbf16, #tpu.memory_space<vmem>>, vector<4x18xbf16>
    tpu.vector_store %arg9[%c0_31, %c163], %48 {strides = array<i32>} : memref<4x342xbf16, #tpu.memory_space<vmem>>, vector<4x18xbf16>,
    %c0_32 = arith.constant 0 : index
    %c0_33 = arith.constant 0 : index
    %c144 = arith.constant 144 : index
    %50 = vector.load %arg1[%c0_32, %c0_33, %c144] : memref<1x4x256xf32, #tpu.memory_space<vmem>>, vector<1x4x16xf32>
    %51 = vector.shape_cast %50 : vector<1x4x16xf32> to vector<4x16xf32>
    %52 = arith.truncf %51 : vector<4x16xf32> to vector<4x16xbf16>
    %53 = tpu.concatenate %52, %0 in 1 : vector<4x16xbf16>, vector<4x2xbf16> -> vector<4x18xbf16>
    %c0_34 = arith.constant 0 : index
    %c181 = arith.constant 181 : index
    %54 = vector.load %arg9[%c0_34, %c181] : memref<4x342xbf16, #tpu.memory_space<vmem>>, vector<4x18xbf16>
    tpu.vector_store %arg9[%c0_34, %c181], %53 {strides = array<i32>} : memref<4x342xbf16, #tpu.memory_space<vmem>>, vector<4x18xbf16>,
    %c0_35 = arith.constant 0 : index
    %c0_36 = arith.constant 0 : index
    %c160 = arith.constant 160 : index
    %55 = vector.load %arg1[%c0_35, %c0_36, %c160] : memref<1x4x256xf32, #tpu.memory_space<vmem>>, vector<1x4x16xf32>
    %56 = vector.shape_cast %55 : vector<1x4x16xf32> to vector<4x16xf32>
    %57 = arith.truncf %56 : vector<4x16xf32> to vector<4x16xbf16>
    %58 = tpu.concatenate %57, %0 in 1 : vector<4x16xbf16>, vector<4x2xbf16> -> vector<4x18xbf16>
    %c0_37 = arith.constant 0 : index
    %c199 = arith.constant 199 : index
    %59 = vector.load %arg9[%c0_37, %c199] : memref<4x342xbf16, #tpu.memory_space<vmem>>, vector<4x18xbf16>
    tpu.vector_store %arg9[%c0_37, %c199], %58 {strides = array<i32>} : memref<4x342xbf16, #tpu.memory_space<vmem>>, vector<4x18xbf16>,
    %c0_38 = arith.constant 0 : index
    %c0_39 = arith.constant 0 : index
    %c176 = arith.constant 176 : index
    %60 = vector.load %arg1[%c0_38, %c0_39, %c176] : memref<1x4x256xf32, #tpu.memory_space<vmem>>, vector<1x4x16xf32>
    %61 = vector.shape_cast %60 : vector<1x4x16xf32> to vector<4x16xf32>
    %62 = arith.truncf %61 : vector<4x16xf32> to vector<4x16xbf16>
    %63 = tpu.concatenate %62, %0 in 1 : vector<4x16xbf16>, vector<4x2xbf16> -> vector<4x18xbf16>
    %c0_40 = arith.constant 0 : index
    %c217 = arith.constant 217 : index
    %64 = vector.load %arg9[%c0_40, %c217] : memref<4x342xbf16, #tpu.memory_space<vmem>>, vector<4x18xbf16>
    tpu.vector_store %arg9[%c0_40, %c217], %63 {strides = array<i32>} : memref<4x342xbf16, #tpu.memory_space<vmem>>, vector<4x18xbf16>,
    %c0_41 = arith.constant 0 : index
    %c0_42 = arith.constant 0 : index
    %c192 = arith.constant 192 : index
    %65 = vector.load %arg1[%c0_41, %c0_42, %c192] : memref<1x4x256xf32, #tpu.memory_space<vmem>>, vector<1x4x16xf32>
    %66 = vector.shape_cast %65 : vector<1x4x16xf32> to vector<4x16xf32>
    %67 = arith.truncf %66 : vector<4x16xf32> to vector<4x16xbf16>
    %68 = tpu.concatenate %67, %0 in 1 : vector<4x16xbf16>, vector<4x2xbf16> -> vector<4x18xbf16>
    %c0_43 = arith.constant 0 : index
    %c235 = arith.constant 235 : index
    %69 = vector.load %arg9[%c0_43, %c235] : memref<4x342xbf16, #tpu.memory_space<vmem>>, vector<4x18xbf16>
    tpu.vector_store %arg9[%c0_43, %c235], %68 {strides = array<i32>} : memref<4x342xbf16, #tpu.memory_space<vmem>>, vector<4x18xbf16>,
    %c0_44 = arith.constant 0 : index
    %c0_45 = arith.constant 0 : index
    %c208 = arith.constant 208 : index
    %70 = vector.load %arg1[%c0_44, %c0_45, %c208] : memref<1x4x256xf32, #tpu.memory_space<vmem>>, vector<1x4x16xf32>
    %71 = vector.shape_cast %70 : vector<1x4x16xf32> to vector<4x16xf32>
    %72 = arith.truncf %71 : vector<4x16xf32> to vector<4x16xbf16>
    %73 = tpu.concatenate %72, %0 in 1 : vector<4x16xbf16>, vector<4x2xbf16> -> vector<4x18xbf16>
    %c0_46 = arith.constant 0 : index
    %c253 = arith.constant 253 : index
    %74 = vector.load %arg9[%c0_46, %c253] : memref<4x342xbf16, #tpu.memory_space<vmem>>, vector<4x18xbf16>
    tpu.vector_store %arg9[%c0_46, %c253], %73 {strides = array<i32>} : memref<4x342xbf16, #tpu.memory_space<vmem>>, vector<4x18xbf16>,
    %c0_47 = arith.constant 0 : index
    %c0_48 = arith.constant 0 : index
    %c224 = arith.constant 224 : index
    %75 = vector.load %arg1[%c0_47, %c0_48, %c224] : memref<1x4x256xf32, #tpu.memory_space<vmem>>, vector<1x4x16xf32>
    %76 = vector.shape_cast %75 : vector<1x4x16xf32> to vector<4x16xf32>
    %77 = arith.truncf %76 : vector<4x16xf32> to vector<4x16xbf16>
    %78 = tpu.concatenate %77, %0 in 1 : vector<4x16xbf16>, vector<4x2xbf16> -> vector<4x18xbf16>
    %c0_49 = arith.constant 0 : index
    %c271 = arith.constant 271 : index
    %79 = vector.load %arg9[%c0_49, %c271] : memref<4x342xbf16, #tpu.memory_space<vmem>>, vector<4x18xbf16>
    tpu.vector_store %arg9[%c0_49, %c271], %78 {strides = array<i32>} : memref<4x342xbf16, #tpu.memory_space<vmem>>, vector<4x18xbf16>,
    %c0_50 = arith.constant 0 : index
    %c0_51 = arith.constant 0 : index
    %c240 = arith.constant 240 : index
    %80 = vector.load %arg1[%c0_50, %c0_51, %c240] : memref<1x4x256xf32, #tpu.memory_space<vmem>>, vector<1x4x16xf32>
    %81 = vector.shape_cast %80 : vector<1x4x16xf32> to vector<4x16xf32>
    %82 = arith.truncf %81 : vector<4x16xf32> to vector<4x16xbf16>
    %83 = tpu.concatenate %82, %0 in 1 : vector<4x16xbf16>, vector<4x2xbf16> -> vector<4x18xbf16>
    %c0_52 = arith.constant 0 : index
    %c289 = arith.constant 289 : index
    %84 = vector.load %arg9[%c0_52, %c289] : memref<4x342xbf16, #tpu.memory_space<vmem>>, vector<4x18xbf16>
    tpu.vector_store %arg9[%c0_52, %c289], %83 {strides = array<i32>} : memref<4x342xbf16, #tpu.memory_space<vmem>>, vector<4x18xbf16>,
    %c0_53 = arith.constant 0 : index
    %c0_54 = arith.constant 0 : index
    %c0_55 = arith.constant 0 : index
    %85 = vector.load %arg2[%c0_53, %c0_54, %c0_55] : memref<9x8x4xbf16, #tpu.memory_space<vmem>>, vector<1x8x4xbf16>
    %86 = vector.shape_cast %85 : vector<1x8x4xbf16> to vector<8x4xbf16>
    %c0_56 = arith.constant 0 : index
    %c0_57 = arith.constant 0 : index
    %87 = vector.load %arg9[%c0_56, %c0_57] : memref<4x342xbf16, #tpu.memory_space<vmem>>, vector<4x288xbf16>
    %cst_58 = arith.constant dense<0.000000e+00> : vector<8x288xf32>
    %88 = tpu.matmul %86, %87, %cst_58 {dimension_numbers = #tpu.dot_dimension_numbers<[1], [0], [0], [1], [0, 0, 1, 1], [], []>} : vector<8x4xbf16>, vector<4x288xbf16>, vector<8x288xf32> -> vector<8x288xf32>
    %c1 = arith.constant 1 : index
    %c0_59 = arith.constant 0 : index
    %c0_60 = arith.constant 0 : index
    %89 = vector.load %arg2[%c1, %c0_59, %c0_60] : memref<9x8x4xbf16, #tpu.memory_space<vmem>>, vector<1x8x4xbf16>
    %90 = vector.shape_cast %89 : vector<1x8x4xbf16> to vector<8x4xbf16>
    %c0_61 = arith.constant 0 : index
    %c1_62 = arith.constant 1 : index
    %91 = vector.load %arg9[%c0_61, %c1_62] : memref<4x342xbf16, #tpu.memory_space<vmem>>, vector<4x288xbf16>
    %cst_63 = arith.constant dense<0.000000e+00> : vector<8x288xf32>
    %92 = tpu.matmul %90, %91, %cst_63 {dimension_numbers = #tpu.dot_dimension_numbers<[1], [0], [0], [1], [0, 0, 1, 1], [], []>} : vector<8x4xbf16>, vector<4x288xbf16>, vector<8x288xf32> -> vector<8x288xf32>
    %93 = arith.addf %88, %92 : vector<8x288xf32>
    %c2 = arith.constant 2 : index
    %c0_64 = arith.constant 0 : index
    %c0_65 = arith.constant 0 : index
    %94 = vector.load %arg2[%c2, %c0_64, %c0_65] : memref<9x8x4xbf16, #tpu.memory_space<vmem>>, vector<1x8x4xbf16>
    %95 = vector.shape_cast %94 : vector<1x8x4xbf16> to vector<8x4xbf16>
    %c0_66 = arith.constant 0 : index
    %c2_67 = arith.constant 2 : index
    %96 = vector.load %arg9[%c0_66, %c2_67] : memref<4x342xbf16, #tpu.memory_space<vmem>>, vector<4x288xbf16>
    %cst_68 = arith.constant dense<0.000000e+00> : vector<8x288xf32>
    %97 = tpu.matmul %95, %96, %cst_68 {dimension_numbers = #tpu.dot_dimension_numbers<[1], [0], [0], [1], [0, 0, 1, 1], [], []>} : vector<8x4xbf16>, vector<4x288xbf16>, vector<8x288xf32> -> vector<8x288xf32>
    %98 = arith.addf %93, %97 : vector<8x288xf32>
    %c3 = arith.constant 3 : index
    %c0_69 = arith.constant 0 : index
    %c0_70 = arith.constant 0 : index
    %99 = vector.load %arg2[%c3, %c0_69, %c0_70] : memref<9x8x4xbf16, #tpu.memory_space<vmem>>, vector<1x8x4xbf16>
    %100 = vector.shape_cast %99 : vector<1x8x4xbf16> to vector<8x4xbf16>
    %c0_71 = arith.constant 0 : index
    %c18 = arith.constant 18 : index
    %101 = vector.load %arg9[%c0_71, %c18] : memref<4x342xbf16, #tpu.memory_space<vmem>>, vector<4x288xbf16>
    %cst_72 = arith.constant dense<0.000000e+00> : vector<8x288xf32>
    %102 = tpu.matmul %100, %101, %cst_72 {dimension_numbers = #tpu.dot_dimension_numbers<[1], [0], [0], [1], [0, 0, 1, 1], [], []>} : vector<8x4xbf16>, vector<4x288xbf16>, vector<8x288xf32> -> vector<8x288xf32>
    %103 = arith.addf %98, %102 : vector<8x288xf32>
    %c4 = arith.constant 4 : index
    %c0_73 = arith.constant 0 : index
    %c0_74 = arith.constant 0 : index
    %104 = vector.load %arg2[%c4, %c0_73, %c0_74] : memref<9x8x4xbf16, #tpu.memory_space<vmem>>, vector<1x8x4xbf16>
    %105 = vector.shape_cast %104 : vector<1x8x4xbf16> to vector<8x4xbf16>
    %c0_75 = arith.constant 0 : index
    %c19_76 = arith.constant 19 : index
    %106 = vector.load %arg9[%c0_75, %c19_76] : memref<4x342xbf16, #tpu.memory_space<vmem>>, vector<4x288xbf16>
    %cst_77 = arith.constant dense<0.000000e+00> : vector<8x288xf32>
    %107 = tpu.matmul %105, %106, %cst_77 {dimension_numbers = #tpu.dot_dimension_numbers<[1], [0], [0], [1], [0, 0, 1, 1], [], []>} : vector<8x4xbf16>, vector<4x288xbf16>, vector<8x288xf32> -> vector<8x288xf32>
    %108 = arith.addf %103, %107 : vector<8x288xf32>
    %c5 = arith.constant 5 : index
    %c0_78 = arith.constant 0 : index
    %c0_79 = arith.constant 0 : index
    %109 = vector.load %arg2[%c5, %c0_78, %c0_79] : memref<9x8x4xbf16, #tpu.memory_space<vmem>>, vector<1x8x4xbf16>
    %110 = vector.shape_cast %109 : vector<1x8x4xbf16> to vector<8x4xbf16>
    %c0_80 = arith.constant 0 : index
    %c20 = arith.constant 20 : index
    %111 = vector.load %arg9[%c0_80, %c20] : memref<4x342xbf16, #tpu.memory_space<vmem>>, vector<4x288xbf16>
    %cst_81 = arith.constant dense<0.000000e+00> : vector<8x288xf32>
    %112 = tpu.matmul %110, %111, %cst_81 {dimension_numbers = #tpu.dot_dimension_numbers<[1], [0], [0], [1], [0, 0, 1, 1], [], []>} : vector<8x4xbf16>, vector<4x288xbf16>, vector<8x288xf32> -> vector<8x288xf32>
    %113 = arith.addf %108, %112 : vector<8x288xf32>
    %c6 = arith.constant 6 : index
    %c0_82 = arith.constant 0 : index
    %c0_83 = arith.constant 0 : index
    %114 = vector.load %arg2[%c6, %c0_82, %c0_83] : memref<9x8x4xbf16, #tpu.memory_space<vmem>>, vector<1x8x4xbf16>
    %115 = vector.shape_cast %114 : vector<1x8x4xbf16> to vector<8x4xbf16>
    %c0_84 = arith.constant 0 : index
    %c36 = arith.constant 36 : index
    %116 = vector.load %arg9[%c0_84, %c36] : memref<4x342xbf16, #tpu.memory_space<vmem>>, vector<4x288xbf16>
    %cst_85 = arith.constant dense<0.000000e+00> : vector<8x288xf32>
    %117 = tpu.matmul %115, %116, %cst_85 {dimension_numbers = #tpu.dot_dimension_numbers<[1], [0], [0], [1], [0, 0, 1, 1], [], []>} : vector<8x4xbf16>, vector<4x288xbf16>, vector<8x288xf32> -> vector<8x288xf32>
    %118 = arith.addf %113, %117 : vector<8x288xf32>
    %c7 = arith.constant 7 : index
    %c0_86 = arith.constant 0 : index
    %c0_87 = arith.constant 0 : index
    %119 = vector.load %arg2[%c7, %c0_86, %c0_87] : memref<9x8x4xbf16, #tpu.memory_space<vmem>>, vector<1x8x4xbf16>
    %120 = vector.shape_cast %119 : vector<1x8x4xbf16> to vector<8x4xbf16>
    %c0_88 = arith.constant 0 : index
    %c37_89 = arith.constant 37 : index
    %121 = vector.load %arg9[%c0_88, %c37_89] : memref<4x342xbf16, #tpu.memory_space<vmem>>, vector<4x288xbf16>
    %cst_90 = arith.constant dense<0.000000e+00> : vector<8x288xf32>
    %122 = tpu.matmul %120, %121, %cst_90 {dimension_numbers = #tpu.dot_dimension_numbers<[1], [0], [0], [1], [0, 0, 1, 1], [], []>} : vector<8x4xbf16>, vector<4x288xbf16>, vector<8x288xf32> -> vector<8x288xf32>
    %123 = arith.addf %118, %122 : vector<8x288xf32>
    %c8 = arith.constant 8 : index
    %c0_91 = arith.constant 0 : index
    %c0_92 = arith.constant 0 : index
    %124 = vector.load %arg2[%c8, %c0_91, %c0_92] : memref<9x8x4xbf16, #tpu.memory_space<vmem>>, vector<1x8x4xbf16>
    %125 = vector.shape_cast %124 : vector<1x8x4xbf16> to vector<8x4xbf16>
    %c0_93 = arith.constant 0 : index
    %c38 = arith.constant 38 : index
    %126 = vector.load %arg9[%c0_93, %c38] : memref<4x342xbf16, #tpu.memory_space<vmem>>, vector<4x288xbf16>
    %cst_94 = arith.constant dense<0.000000e+00> : vector<8x288xf32>
    %127 = tpu.matmul %125, %126, %cst_94 {dimension_numbers = #tpu.dot_dimension_numbers<[1], [0], [0], [1], [0, 0, 1, 1], [], []>} : vector<8x4xbf16>, vector<4x288xbf16>, vector<8x288xf32> -> vector<8x288xf32>
    %128 = arith.addf %123, %127 : vector<8x288xf32>
    %129 = tpu.iota {dimensions = array<i32: 1>} : vector<1x288xi32>
    %c18_i32 = arith.constant 18 : i32
    %c0_i32 = arith.constant 0 : i32
    %130 = arith.cmpi eq, %c18_i32, %c0_i32 : i32
    %c1_i32 = arith.constant 1 : i32
    %131 = arith.select %130, %c1_i32, %c18_i32 : i32
    %132 = vector.broadcast %131 : i32 to vector<1x288xi32>
    %133 = arith.remsi %129, %132 : vector<1x288xi32>
    %c0_i32_95 = arith.constant 0 : i32
    %134 = vector.broadcast %c0_i32_95 : i32 to vector<1x288xi32>
    %135 = arith.cmpi ne, %133, %134 : vector<1x288xi32>
    %c0_i32_96 = arith.constant 0 : i32
    %136 = vector.broadcast %c0_i32_96 : i32 to vector<1x288xi32>
    %137 = arith.cmpi slt, %133, %136 : vector<1x288xi32>
    %c0_i32_97 = arith.constant 0 : i32
    %138 = arith.cmpi slt, %131, %c0_i32_97 : i32
    %139 = vector.broadcast %138 : i1 to vector<1x288xi1>
    %140 = vector.broadcast %139 : vector<1x288xi1> to vector<1x288xi1>
    %141 = arith.xori %137, %140 : vector<1x288xi1>
    %142 = arith.andi %141, %135 : vector<1x288xi1>
    %143 = vector.broadcast %131 : i32 to vector<1x288xi32>
    %144 = arith.addi %133, %143 : vector<1x288xi32>
    %145 = arith.select %142, %144, %133 : vector<1x288xi1>, vector<1x288xi32>
    %c16_i32 = arith.constant 16 : i32
    %146 = vector.broadcast %c16_i32 : i32 to vector<1x288xi32>
    %147 = arith.cmpi slt, %145, %146 : vector<1x288xi32>
    %c0_98 = arith.constant 0 : index
    %c0_99 = arith.constant 0 : index
    %148 = vector.load %arg3[%c0_98, %c0_99] : memref<8x1xf32, #tpu.memory_space<vmem>>, vector<8x1xf32>
    %149 = vector.broadcast %148 : vector<8x1xf32> to vector<8x288xf32>
    %150 = arith.addf %128, %149 : vector<8x288xf32>
    %cst_100 = arith.constant 0.000000e+00 : f32
    %151 = vector.broadcast %cst_100 : f32 to vector<8x288xf32>
    %152 = arith.maximumf %150, %151 : vector<8x288xf32>
    %cst_101 = arith.constant 0.000000e+00 : f32
    %153 = vector.shape_cast %147 : vector<1x288xi1> to vector<1x288xi1>
    %154 = vector.broadcast %153 : vector<1x288xi1> to vector<8x288xi1>
    %155 = vector.broadcast %cst_101 : f32 to vector<8x288xf32>
    %156 = arith.select %154, %152, %155 : vector<8x288xi1>, vector<8x288xf32>
    %cst_102 = arith.constant 0.000000e+00 : bf16
    %157 = vector.broadcast %cst_102 : bf16 to vector<8x19xbf16>
    %c0_103 = arith.constant 0 : index
    %c0_104 = arith.constant 0 : index
    %158 = vector.load %arg10[%c0_103, %c0_104] : memref<8x342xbf16, #tpu.memory_space<vmem>>, vector<8x19xbf16>
    tpu.vector_store %arg10[%c0_103, %c0_104], %157 {strides = array<i32>} : memref<8x342xbf16, #tpu.memory_space<vmem>>, vector<8x19xbf16>,
    %cst_105 = arith.constant 0.000000e+00 : bf16
    %159 = vector.broadcast %cst_105 : bf16 to vector<8x35xbf16>
    %c0_106 = arith.constant 0 : index
    %c307_107 = arith.constant 307 : index
    %160 = vector.load %arg10[%c0_106, %c307_107] : memref<8x342xbf16, #tpu.memory_space<vmem>>, vector<8x35xbf16>
    tpu.vector_store %arg10[%c0_106, %c307_107], %159 {strides = array<i32>} : memref<8x342xbf16, #tpu.memory_space<vmem>>, vector<8x35xbf16>,
    %161 = arith.truncf %156 : vector<8x288xf32> to vector<8x288xbf16>
    %c0_108 = arith.constant 0 : index
    %c19_109 = arith.constant 19 : index
    %162 = vector.load %arg10[%c0_108, %c19_109] : memref<8x342xbf16, #tpu.memory_space<vmem>>, vector<8x288xbf16>
    tpu.vector_store %arg10[%c0_108, %c19_109], %161 {strides = array<i32>} : memref<8x342xbf16, #tpu.memory_space<vmem>>, vector<8x288xbf16>,
    %c0_110 = arith.constant 0 : index
    %c0_111 = arith.constant 0 : index
    %c0_112 = arith.constant 0 : index
    %163 = vector.load %arg4[%c0_110, %c0_111, %c0_112] : memref<9x8x8xbf16, #tpu.memory_space<vmem>>, vector<1x8x8xbf16>
    %164 = vector.shape_cast %163 : vector<1x8x8xbf16> to vector<8x8xbf16>
    %c0_113 = arith.constant 0 : index
    %c0_114 = arith.constant 0 : index
    %165 = vector.load %arg10[%c0_113, %c0_114] : memref<8x342xbf16, #tpu.memory_space<vmem>>, vector<8x288xbf16>
    %cst_115 = arith.constant dense<0.000000e+00> : vector<8x288xf32>
    %166 = tpu.matmul %164, %165, %cst_115 {dimension_numbers = #tpu.dot_dimension_numbers<[1], [0], [0], [1], [0, 0, 1, 1], [], []>} : vector<8x8xbf16>, vector<8x288xbf16>, vector<8x288xf32> -> vector<8x288xf32>
    %c1_116 = arith.constant 1 : index
    %c0_117 = arith.constant 0 : index
    %c0_118 = arith.constant 0 : index
    %167 = vector.load %arg4[%c1_116, %c0_117, %c0_118] : memref<9x8x8xbf16, #tpu.memory_space<vmem>>, vector<1x8x8xbf16>
    %168 = vector.shape_cast %167 : vector<1x8x8xbf16> to vector<8x8xbf16>
    %c0_119 = arith.constant 0 : index
    %c1_120 = arith.constant 1 : index
    %169 = vector.load %arg10[%c0_119, %c1_120] : memref<8x342xbf16, #tpu.memory_space<vmem>>, vector<8x288xbf16>
    %cst_121 = arith.constant dense<0.000000e+00> : vector<8x288xf32>
    %170 = tpu.matmul %168, %169, %cst_121 {dimension_numbers = #tpu.dot_dimension_numbers<[1], [0], [0], [1], [0, 0, 1, 1], [], []>} : vector<8x8xbf16>, vector<8x288xbf16>, vector<8x288xf32> -> vector<8x288xf32>
    %171 = arith.addf %166, %170 : vector<8x288xf32>
    %c2_122 = arith.constant 2 : index
    %c0_123 = arith.constant 0 : index
    %c0_124 = arith.constant 0 : index
    %172 = vector.load %arg4[%c2_122, %c0_123, %c0_124] : memref<9x8x8xbf16, #tpu.memory_space<vmem>>, vector<1x8x8xbf16>
    %173 = vector.shape_cast %172 : vector<1x8x8xbf16> to vector<8x8xbf16>
    %c0_125 = arith.constant 0 : index
    %c2_126 = arith.constant 2 : index
    %174 = vector.load %arg10[%c0_125, %c2_126] : memref<8x342xbf16, #tpu.memory_space<vmem>>, vector<8x288xbf16>
    %cst_127 = arith.constant dense<0.000000e+00> : vector<8x288xf32>
    %175 = tpu.matmul %173, %174, %cst_127 {dimension_numbers = #tpu.dot_dimension_numbers<[1], [0], [0], [1], [0, 0, 1, 1], [], []>} : vector<8x8xbf16>, vector<8x288xbf16>, vector<8x288xf32> -> vector<8x288xf32>
    %176 = arith.addf %171, %175 : vector<8x288xf32>
    %c3_128 = arith.constant 3 : index
    %c0_129 = arith.constant 0 : index
    %c0_130 = arith.constant 0 : index
    %177 = vector.load %arg4[%c3_128, %c0_129, %c0_130] : memref<9x8x8xbf16, #tpu.memory_space<vmem>>, vector<1x8x8xbf16>
    %178 = vector.shape_cast %177 : vector<1x8x8xbf16> to vector<8x8xbf16>
    %c0_131 = arith.constant 0 : index
    %c18_132 = arith.constant 18 : index
    %179 = vector.load %arg10[%c0_131, %c18_132] : memref<8x342xbf16, #tpu.memory_space<vmem>>, vector<8x288xbf16>
    %cst_133 = arith.constant dense<0.000000e+00> : vector<8x288xf32>
    %180 = tpu.matmul %178, %179, %cst_133 {dimension_numbers = #tpu.dot_dimension_numbers<[1], [0], [0], [1], [0, 0, 1, 1], [], []>} : vector<8x8xbf16>, vector<8x288xbf16>, vector<8x288xf32> -> vector<8x288xf32>
    %181 = arith.addf %176, %180 : vector<8x288xf32>
    %c4_134 = arith.constant 4 : index
    %c0_135 = arith.constant 0 : index
    %c0_136 = arith.constant 0 : index
    %182 = vector.load %arg4[%c4_134, %c0_135, %c0_136] : memref<9x8x8xbf16, #tpu.memory_space<vmem>>, vector<1x8x8xbf16>
    %183 = vector.shape_cast %182 : vector<1x8x8xbf16> to vector<8x8xbf16>
    %c0_137 = arith.constant 0 : index
    %c19_138 = arith.constant 19 : index
    %184 = vector.load %arg10[%c0_137, %c19_138] : memref<8x342xbf16, #tpu.memory_space<vmem>>, vector<8x288xbf16>
    %cst_139 = arith.constant dense<0.000000e+00> : vector<8x288xf32>
    %185 = tpu.matmul %183, %184, %cst_139 {dimension_numbers = #tpu.dot_dimension_numbers<[1], [0], [0], [1], [0, 0, 1, 1], [], []>} : vector<8x8xbf16>, vector<8x288xbf16>, vector<8x288xf32> -> vector<8x288xf32>
    %186 = arith.addf %181, %185 : vector<8x288xf32>
    %c5_140 = arith.constant 5 : index
    %c0_141 = arith.constant 0 : index
    %c0_142 = arith.constant 0 : index
    %187 = vector.load %arg4[%c5_140, %c0_141, %c0_142] : memref<9x8x8xbf16, #tpu.memory_space<vmem>>, vector<1x8x8xbf16>
    %188 = vector.shape_cast %187 : vector<1x8x8xbf16> to vector<8x8xbf16>
    %c0_143 = arith.constant 0 : index
    %c20_144 = arith.constant 20 : index
    %189 = vector.load %arg10[%c0_143, %c20_144] : memref<8x342xbf16, #tpu.memory_space<vmem>>, vector<8x288xbf16>
    %cst_145 = arith.constant dense<0.000000e+00> : vector<8x288xf32>
    %190 = tpu.matmul %188, %189, %cst_145 {dimension_numbers = #tpu.dot_dimension_numbers<[1], [0], [0], [1], [0, 0, 1, 1], [], []>} : vector<8x8xbf16>, vector<8x288xbf16>, vector<8x288xf32> -> vector<8x288xf32>
    %191 = arith.addf %186, %190 : vector<8x288xf32>
    %c6_146 = arith.constant 6 : index
    %c0_147 = arith.constant 0 : index
    %c0_148 = arith.constant 0 : index
    %192 = vector.load %arg4[%c6_146, %c0_147, %c0_148] : memref<9x8x8xbf16, #tpu.memory_space<vmem>>, vector<1x8x8xbf16>
    %193 = vector.shape_cast %192 : vector<1x8x8xbf16> to vector<8x8xbf16>
    %c0_149 = arith.constant 0 : index
    %c36_150 = arith.constant 36 : index
    %194 = vector.load %arg10[%c0_149, %c36_150] : memref<8x342xbf16, #tpu.memory_space<vmem>>, vector<8x288xbf16>
    %cst_151 = arith.constant dense<0.000000e+00> : vector<8x288xf32>
    %195 = tpu.matmul %193, %194, %cst_151 {dimension_numbers = #tpu.dot_dimension_numbers<[1], [0], [0], [1], [0, 0, 1, 1], [], []>} : vector<8x8xbf16>, vector<8x288xbf16>, vector<8x288xf32> -> vector<8x288xf32>
    %196 = arith.addf %191, %195 : vector<8x288xf32>
    %c7_152 = arith.constant 7 : index
    %c0_153 = arith.constant 0 : index
    %c0_154 = arith.constant 0 : index
    %197 = vector.load %arg4[%c7_152, %c0_153, %c0_154] : memref<9x8x8xbf16, #tpu.memory_space<vmem>>, vector<1x8x8xbf16>
    %198 = vector.shape_cast %197 : vector<1x8x8xbf16> to vector<8x8xbf16>
    %c0_155 = arith.constant 0 : index
    %c37_156 = arith.constant 37 : index
    %199 = vector.load %arg10[%c0_155, %c37_156] : memref<8x342xbf16, #tpu.memory_space<vmem>>, vector<8x288xbf16>
    %cst_157 = arith.constant dense<0.000000e+00> : vector<8x288xf32>
    %200 = tpu.matmul %198, %199, %cst_157 {dimension_numbers = #tpu.dot_dimension_numbers<[1], [0], [0], [1], [0, 0, 1, 1], [], []>} : vector<8x8xbf16>, vector<8x288xbf16>, vector<8x288xf32> -> vector<8x288xf32>
    %201 = arith.addf %196, %200 : vector<8x288xf32>
    %c8_158 = arith.constant 8 : index
    %c0_159 = arith.constant 0 : index
    %c0_160 = arith.constant 0 : index
    %202 = vector.load %arg4[%c8_158, %c0_159, %c0_160] : memref<9x8x8xbf16, #tpu.memory_space<vmem>>, vector<1x8x8xbf16>
    %203 = vector.shape_cast %202 : vector<1x8x8xbf16> to vector<8x8xbf16>
    %c0_161 = arith.constant 0 : index
    %c38_162 = arith.constant 38 : index
    %204 = vector.load %arg10[%c0_161, %c38_162] : memref<8x342xbf16, #tpu.memory_space<vmem>>, vector<8x288xbf16>
    %cst_163 = arith.constant dense<0.000000e+00> : vector<8x288xf32>
    %205 = tpu.matmul %203, %204, %cst_163 {dimension_numbers = #tpu.dot_dimension_numbers<[1], [0], [0], [1], [0, 0, 1, 1], [], []>} : vector<8x8xbf16>, vector<8x288xbf16>, vector<8x288xf32> -> vector<8x288xf32>
    %206 = arith.addf %201, %205 : vector<8x288xf32>
    %c0_164 = arith.constant 0 : index
    %c0_165 = arith.constant 0 : index
    %207 = vector.load %arg5[%c0_164, %c0_165] : memref<8x1xf32, #tpu.memory_space<vmem>>, vector<8x1xf32>
    %208 = vector.broadcast %207 : vector<8x1xf32> to vector<8x288xf32>
    %209 = arith.addf %206, %208 : vector<8x288xf32>
    %c0_166 = arith.constant 0 : index
    %c19_167 = arith.constant 19 : index
    %210 = vector.load %arg9[%c0_166, %c19_167] : memref<4x342xbf16, #tpu.memory_space<vmem>>, vector<4x288xbf16>
    %c0_168 = arith.constant 0 : index
    %c0_169 = arith.constant 0 : index
    %211 = vector.load %arg6[%c0_168, %c0_169] : memref<8x4xbf16, #tpu.memory_space<vmem>>, vector<8x4xbf16>
    %cst_170 = arith.constant dense<0.000000e+00> : vector<8x288xf32>
    %212 = tpu.matmul %211, %210, %cst_170 {dimension_numbers = #tpu.dot_dimension_numbers<[1], [0], [0], [1], [0, 0, 1, 1], [], []>} : vector<8x4xbf16>, vector<4x288xbf16>, vector<8x288xf32> -> vector<8x288xf32>
    %213 = arith.addf %209, %212 : vector<8x288xf32>
    %c0_171 = arith.constant 0 : index
    %c0_172 = arith.constant 0 : index
    %214 = vector.load %arg7[%c0_171, %c0_172] : memref<8x1xf32, #tpu.memory_space<vmem>>, vector<8x1xf32>
    %215 = vector.broadcast %214 : vector<8x1xf32> to vector<8x288xf32>
    %216 = arith.addf %213, %215 : vector<8x288xf32>
    %217 = vector.extract_strided_slice %216 {offsets = [0, 0], sizes = [8, 16], strides = [1, 1]} : vector<8x288xf32> to vector<8x16xf32>
    %cst_173 = arith.constant 0.000000e+00 : f32
    %218 = vector.broadcast %cst_173 : f32 to vector<8x16xf32>
    %219 = arith.maximumf %217, %218 : vector<8x16xf32>
    %c0_174 = arith.constant 0 : index
    %c0_175 = arith.constant 0 : index
    %c0_176 = arith.constant 0 : index
    %220 = vector.load %arg8[%c0_174, %c0_175, %c0_176] : memref<1x8x256xf32, #tpu.memory_space<vmem>>, vector<1x8x16xf32>
    %221 = vector.shape_cast %220 : vector<1x8x16xf32> to vector<8x16xf32>
    %222 = vector.shape_cast %219 : vector<8x16xf32> to vector<1x8x16xf32>
    tpu.vector_store %arg8[%c0_174, %c0_175, %c0_176], %222 {strides = array<i32>} : memref<1x8x256xf32, #tpu.memory_space<vmem>>, vector<1x8x16xf32>,
    %223 = vector.extract_strided_slice %216 {offsets = [0, 18], sizes = [8, 16], strides = [1, 1]} : vector<8x288xf32> to vector<8x16xf32>
    %cst_177 = arith.constant 0.000000e+00 : f32
    %224 = vector.broadcast %cst_177 : f32 to vector<8x16xf32>
    %225 = arith.maximumf %223, %224 : vector<8x16xf32>
    %c0_178 = arith.constant 0 : index
    %c0_179 = arith.constant 0 : index
    %c16_180 = arith.constant 16 : index
    %226 = vector.load %arg8[%c0_178, %c0_179, %c16_180] : memref<1x8x256xf32, #tpu.memory_space<vmem>>, vector<1x8x16xf32>
    %227 = vector.shape_cast %226 : vector<1x8x16xf32> to vector<8x16xf32>
    %228 = vector.shape_cast %225 : vector<8x16xf32> to vector<1x8x16xf32>
    tpu.vector_store %arg8[%c0_178, %c0_179, %c16_180], %228 {strides = array<i32>} : memref<1x8x256xf32, #tpu.memory_space<vmem>>, vector<1x8x16xf32>,
    %229 = vector.extract_strided_slice %216 {offsets = [0, 36], sizes = [8, 16], strides = [1, 1]} : vector<8x288xf32> to vector<8x16xf32>
    %cst_181 = arith.constant 0.000000e+00 : f32
    %230 = vector.broadcast %cst_181 : f32 to vector<8x16xf32>
    %231 = arith.maximumf %229, %230 : vector<8x16xf32>
    %c0_182 = arith.constant 0 : index
    %c0_183 = arith.constant 0 : index
    %c32_184 = arith.constant 32 : index
    %232 = vector.load %arg8[%c0_182, %c0_183, %c32_184] : memref<1x8x256xf32, #tpu.memory_space<vmem>>, vector<1x8x16xf32>
    %233 = vector.shape_cast %232 : vector<1x8x16xf32> to vector<8x16xf32>
    %234 = vector.shape_cast %231 : vector<8x16xf32> to vector<1x8x16xf32>
    tpu.vector_store %arg8[%c0_182, %c0_183, %c32_184], %234 {strides = array<i32>} : memref<1x8x256xf32, #tpu.memory_space<vmem>>, vector<1x8x16xf32>,
    %235 = vector.extract_strided_slice %216 {offsets = [0, 54], sizes = [8, 16], strides = [1, 1]} : vector<8x288xf32> to vector<8x16xf32>
    %cst_185 = arith.constant 0.000000e+00 : f32
    %236 = vector.broadcast %cst_185 : f32 to vector<8x16xf32>
    %237 = arith.maximumf %235, %236 : vector<8x16xf32>
    %c0_186 = arith.constant 0 : index
    %c0_187 = arith.constant 0 : index
    %c48_188 = arith.constant 48 : index
    %238 = vector.load %arg8[%c0_186, %c0_187, %c48_188] : memref<1x8x256xf32, #tpu.memory_space<vmem>>, vector<1x8x16xf32>
    %239 = vector.shape_cast %238 : vector<1x8x16xf32> to vector<8x16xf32>
    %240 = vector.shape_cast %237 : vector<8x16xf32> to vector<1x8x16xf32>
    tpu.vector_store %arg8[%c0_186, %c0_187, %c48_188], %240 {strides = array<i32>} : memref<1x8x256xf32, #tpu.memory_space<vmem>>, vector<1x8x16xf32>,
    %241 = vector.extract_strided_slice %216 {offsets = [0, 72], sizes = [8, 16], strides = [1, 1]} : vector<8x288xf32> to vector<8x16xf32>
    %cst_189 = arith.constant 0.000000e+00 : f32
    %242 = vector.broadcast %cst_189 : f32 to vector<8x16xf32>
    %243 = arith.maximumf %241, %242 : vector<8x16xf32>
    %c0_190 = arith.constant 0 : index
    %c0_191 = arith.constant 0 : index
    %c64_192 = arith.constant 64 : index
    %244 = vector.load %arg8[%c0_190, %c0_191, %c64_192] : memref<1x8x256xf32, #tpu.memory_space<vmem>>, vector<1x8x16xf32>
    %245 = vector.shape_cast %244 : vector<1x8x16xf32> to vector<8x16xf32>
    %246 = vector.shape_cast %243 : vector<8x16xf32> to vector<1x8x16xf32>
    tpu.vector_store %arg8[%c0_190, %c0_191, %c64_192], %246 {strides = array<i32>} : memref<1x8x256xf32, #tpu.memory_space<vmem>>, vector<1x8x16xf32>,
    %247 = vector.extract_strided_slice %216 {offsets = [0, 90], sizes = [8, 16], strides = [1, 1]} : vector<8x288xf32> to vector<8x16xf32>
    %cst_193 = arith.constant 0.000000e+00 : f32
    %248 = vector.broadcast %cst_193 : f32 to vector<8x16xf32>
    %249 = arith.maximumf %247, %248 : vector<8x16xf32>
    %c0_194 = arith.constant 0 : index
    %c0_195 = arith.constant 0 : index
    %c80_196 = arith.constant 80 : index
    %250 = vector.load %arg8[%c0_194, %c0_195, %c80_196] : memref<1x8x256xf32, #tpu.memory_space<vmem>>, vector<1x8x16xf32>
    %251 = vector.shape_cast %250 : vector<1x8x16xf32> to vector<8x16xf32>
    %252 = vector.shape_cast %249 : vector<8x16xf32> to vector<1x8x16xf32>
    tpu.vector_store %arg8[%c0_194, %c0_195, %c80_196], %252 {strides = array<i32>} : memref<1x8x256xf32, #tpu.memory_space<vmem>>, vector<1x8x16xf32>,
    %253 = vector.extract_strided_slice %216 {offsets = [0, 108], sizes = [8, 16], strides = [1, 1]} : vector<8x288xf32> to vector<8x16xf32>
    %cst_197 = arith.constant 0.000000e+00 : f32
    %254 = vector.broadcast %cst_197 : f32 to vector<8x16xf32>
    %255 = arith.maximumf %253, %254 : vector<8x16xf32>
    %c0_198 = arith.constant 0 : index
    %c0_199 = arith.constant 0 : index
    %c96_200 = arith.constant 96 : index
    %256 = vector.load %arg8[%c0_198, %c0_199, %c96_200] : memref<1x8x256xf32, #tpu.memory_space<vmem>>, vector<1x8x16xf32>
    %257 = vector.shape_cast %256 : vector<1x8x16xf32> to vector<8x16xf32>
    %258 = vector.shape_cast %255 : vector<8x16xf32> to vector<1x8x16xf32>
    tpu.vector_store %arg8[%c0_198, %c0_199, %c96_200], %258 {strides = array<i32>} : memref<1x8x256xf32, #tpu.memory_space<vmem>>, vector<1x8x16xf32>,
    %259 = vector.extract_strided_slice %216 {offsets = [0, 126], sizes = [8, 16], strides = [1, 1]} : vector<8x288xf32> to vector<8x16xf32>
    %cst_201 = arith.constant 0.000000e+00 : f32
    %260 = vector.broadcast %cst_201 : f32 to vector<8x16xf32>
    %261 = arith.maximumf %259, %260 : vector<8x16xf32>
    %c0_202 = arith.constant 0 : index
    %c0_203 = arith.constant 0 : index
    %c112_204 = arith.constant 112 : index
    %262 = vector.load %arg8[%c0_202, %c0_203, %c112_204] : memref<1x8x256xf32, #tpu.memory_space<vmem>>, vector<1x8x16xf32>
    %263 = vector.shape_cast %262 : vector<1x8x16xf32> to vector<8x16xf32>
    %264 = vector.shape_cast %261 : vector<8x16xf32> to vector<1x8x16xf32>
    tpu.vector_store %arg8[%c0_202, %c0_203, %c112_204], %264 {strides = array<i32>} : memref<1x8x256xf32, #tpu.memory_space<vmem>>, vector<1x8x16xf32>,
    %265 = vector.extract_strided_slice %216 {offsets = [0, 144], sizes = [8, 16], strides = [1, 1]} : vector<8x288xf32> to vector<8x16xf32>
    %cst_205 = arith.constant 0.000000e+00 : f32
    %266 = vector.broadcast %cst_205 : f32 to vector<8x16xf32>
    %267 = arith.maximumf %265, %266 : vector<8x16xf32>
    %c0_206 = arith.constant 0 : index
    %c0_207 = arith.constant 0 : index
    %c128_208 = arith.constant 128 : index
    %268 = vector.load %arg8[%c0_206, %c0_207, %c128_208] : memref<1x8x256xf32, #tpu.memory_space<vmem>>, vector<1x8x16xf32>
    %269 = vector.shape_cast %268 : vector<1x8x16xf32> to vector<8x16xf32>
    %270 = vector.shape_cast %267 : vector<8x16xf32> to vector<1x8x16xf32>
    tpu.vector_store %arg8[%c0_206, %c0_207, %c128_208], %270 {strides = array<i32>} : memref<1x8x256xf32, #tpu.memory_space<vmem>>, vector<1x8x16xf32>,
    %271 = vector.extract_strided_slice %216 {offsets = [0, 162], sizes = [8, 16], strides = [1, 1]} : vector<8x288xf32> to vector<8x16xf32>
    %cst_209 = arith.constant 0.000000e+00 : f32
    %272 = vector.broadcast %cst_209 : f32 to vector<8x16xf32>
    %273 = arith.maximumf %271, %272 : vector<8x16xf32>
    %c0_210 = arith.constant 0 : index
    %c0_211 = arith.constant 0 : index
    %c144_212 = arith.constant 144 : index
    %274 = vector.load %arg8[%c0_210, %c0_211, %c144_212] : memref<1x8x256xf32, #tpu.memory_space<vmem>>, vector<1x8x16xf32>
    %275 = vector.shape_cast %274 : vector<1x8x16xf32> to vector<8x16xf32>
    %276 = vector.shape_cast %273 : vector<8x16xf32> to vector<1x8x16xf32>
    tpu.vector_store %arg8[%c0_210, %c0_211, %c144_212], %276 {strides = array<i32>} : memref<1x8x256xf32, #tpu.memory_space<vmem>>, vector<1x8x16xf32>,
    %277 = vector.extract_strided_slice %216 {offsets = [0, 180], sizes = [8, 16], strides = [1, 1]} : vector<8x288xf32> to vector<8x16xf32>
    %cst_213 = arith.constant 0.000000e+00 : f32
    %278 = vector.broadcast %cst_213 : f32 to vector<8x16xf32>
    %279 = arith.maximumf %277, %278 : vector<8x16xf32>
    %c0_214 = arith.constant 0 : index
    %c0_215 = arith.constant 0 : index
    %c160_216 = arith.constant 160 : index
    %280 = vector.load %arg8[%c0_214, %c0_215, %c160_216] : memref<1x8x256xf32, #tpu.memory_space<vmem>>, vector<1x8x16xf32>
    %281 = vector.shape_cast %280 : vector<1x8x16xf32> to vector<8x16xf32>
    %282 = vector.shape_cast %279 : vector<8x16xf32> to vector<1x8x16xf32>
    tpu.vector_store %arg8[%c0_214, %c0_215, %c160_216], %282 {strides = array<i32>} : memref<1x8x256xf32, #tpu.memory_space<vmem>>, vector<1x8x16xf32>,
    %283 = vector.extract_strided_slice %216 {offsets = [0, 198], sizes = [8, 16], strides = [1, 1]} : vector<8x288xf32> to vector<8x16xf32>
    %cst_217 = arith.constant 0.000000e+00 : f32
    %284 = vector.broadcast %cst_217 : f32 to vector<8x16xf32>
    %285 = arith.maximumf %283, %284 : vector<8x16xf32>
    %c0_218 = arith.constant 0 : index
    %c0_219 = arith.constant 0 : index
    %c176_220 = arith.constant 176 : index
    %286 = vector.load %arg8[%c0_218, %c0_219, %c176_220] : memref<1x8x256xf32, #tpu.memory_space<vmem>>, vector<1x8x16xf32>
    %287 = vector.shape_cast %286 : vector<1x8x16xf32> to vector<8x16xf32>
    %288 = vector.shape_cast %285 : vector<8x16xf32> to vector<1x8x16xf32>
    tpu.vector_store %arg8[%c0_218, %c0_219, %c176_220], %288 {strides = array<i32>} : memref<1x8x256xf32, #tpu.memory_space<vmem>>, vector<1x8x16xf32>,
    %289 = vector.extract_strided_slice %216 {offsets = [0, 216], sizes = [8, 16], strides = [1, 1]} : vector<8x288xf32> to vector<8x16xf32>
    %cst_221 = arith.constant 0.000000e+00 : f32
    %290 = vector.broadcast %cst_221 : f32 to vector<8x16xf32>
    %291 = arith.maximumf %289, %290 : vector<8x16xf32>
    %c0_222 = arith.constant 0 : index
    %c0_223 = arith.constant 0 : index
    %c192_224 = arith.constant 192 : index
    %292 = vector.load %arg8[%c0_222, %c0_223, %c192_224] : memref<1x8x256xf32, #tpu.memory_space<vmem>>, vector<1x8x16xf32>
    %293 = vector.shape_cast %292 : vector<1x8x16xf32> to vector<8x16xf32>
    %294 = vector.shape_cast %291 : vector<8x16xf32> to vector<1x8x16xf32>
    tpu.vector_store %arg8[%c0_222, %c0_223, %c192_224], %294 {strides = array<i32>} : memref<1x8x256xf32, #tpu.memory_space<vmem>>, vector<1x8x16xf32>,
    %295 = vector.extract_strided_slice %216 {offsets = [0, 234], sizes = [8, 16], strides = [1, 1]} : vector<8x288xf32> to vector<8x16xf32>
    %cst_225 = arith.constant 0.000000e+00 : f32
    %296 = vector.broadcast %cst_225 : f32 to vector<8x16xf32>
    %297 = arith.maximumf %295, %296 : vector<8x16xf32>
    %c0_226 = arith.constant 0 : index
    %c0_227 = arith.constant 0 : index
    %c208_228 = arith.constant 208 : index
    %298 = vector.load %arg8[%c0_226, %c0_227, %c208_228] : memref<1x8x256xf32, #tpu.memory_space<vmem>>, vector<1x8x16xf32>
    %299 = vector.shape_cast %298 : vector<1x8x16xf32> to vector<8x16xf32>
    %300 = vector.shape_cast %297 : vector<8x16xf32> to vector<1x8x16xf32>
    tpu.vector_store %arg8[%c0_226, %c0_227, %c208_228], %300 {strides = array<i32>} : memref<1x8x256xf32, #tpu.memory_space<vmem>>, vector<1x8x16xf32>,
    %301 = vector.extract_strided_slice %216 {offsets = [0, 252], sizes = [8, 16], strides = [1, 1]} : vector<8x288xf32> to vector<8x16xf32>
    %cst_229 = arith.constant 0.000000e+00 : f32
    %302 = vector.broadcast %cst_229 : f32 to vector<8x16xf32>
    %303 = arith.maximumf %301, %302 : vector<8x16xf32>
    %c0_230 = arith.constant 0 : index
    %c0_231 = arith.constant 0 : index
    %c224_232 = arith.constant 224 : index
    %304 = vector.load %arg8[%c0_230, %c0_231, %c224_232] : memref<1x8x256xf32, #tpu.memory_space<vmem>>, vector<1x8x16xf32>
    %305 = vector.shape_cast %304 : vector<1x8x16xf32> to vector<8x16xf32>
    %306 = vector.shape_cast %303 : vector<8x16xf32> to vector<1x8x16xf32>
    tpu.vector_store %arg8[%c0_230, %c0_231, %c224_232], %306 {strides = array<i32>} : memref<1x8x256xf32, #tpu.memory_space<vmem>>, vector<1x8x16xf32>,
    %307 = vector.extract_strided_slice %216 {offsets = [0, 270], sizes = [8, 16], strides = [1, 1]} : vector<8x288xf32> to vector<8x16xf32>
    %cst_233 = arith.constant 0.000000e+00 : f32
    %308 = vector.broadcast %cst_233 : f32 to vector<8x16xf32>
    %309 = arith.maximumf %307, %308 : vector<8x16xf32>
    %c0_234 = arith.constant 0 : index
    %c0_235 = arith.constant 0 : index
    %c240_236 = arith.constant 240 : index
    %310 = vector.load %arg8[%c0_234, %c0_235, %c240_236] : memref<1x8x256xf32, #tpu.memory_space<vmem>>, vector<1x8x16xf32>
    %311 = vector.shape_cast %310 : vector<1x8x16xf32> to vector<8x16xf32>
    %312 = vector.shape_cast %309 : vector<8x16xf32> to vector<1x8x16xf32>
    tpu.vector_store %arg8[%c0_234, %c0_235, %c240_236], %312 {strides = array<i32>} : memref<1x8x256xf32, #tpu.memory_space<vmem>>, vector<1x8x16xf32>,
    return
  }
  func.func @transform_0(%arg0: i32) -> (i32, i32, i32) {
    %c0_i32 = arith.constant 0 : i32
    %c0_i32_0 = arith.constant 0 : i32
    %c0_i32_1 = arith.constant 0 : i32
    return %arg0, %c0_i32, %c0_i32_0 : i32, i32, i32
  }
  func.func @transform_1(%arg0: i32) -> (i32, i32, i32) {
    %c0_i32 = arith.constant 0 : i32
    %c0_i32_0 = arith.constant 0 : i32
    %c0_i32_1 = arith.constant 0 : i32
    %c0_i32_2 = arith.constant 0 : i32
    return %c0_i32, %c0_i32_0, %c0_i32_1 : i32, i32, i32
  }
  func.func @transform_2(%arg0: i32) -> (i32, i32) {
    %c0_i32 = arith.constant 0 : i32
    %c0_i32_0 = arith.constant 0 : i32
    %c0_i32_1 = arith.constant 0 : i32
    return %c0_i32, %c0_i32_0 : i32, i32
  }
  func.func @transform_3(%arg0: i32) -> (i32, i32, i32) {
    %c0_i32 = arith.constant 0 : i32
    %c0_i32_0 = arith.constant 0 : i32
    %c0_i32_1 = arith.constant 0 : i32
    %c0_i32_2 = arith.constant 0 : i32
    return %c0_i32, %c0_i32_0, %c0_i32_1 : i32, i32, i32
  }
  func.func @transform_4(%arg0: i32) -> (i32, i32) {
    %c0_i32 = arith.constant 0 : i32
    %c0_i32_0 = arith.constant 0 : i32
    %c0_i32_1 = arith.constant 0 : i32
    return %c0_i32, %c0_i32_0 : i32, i32
  }
  func.func @transform_5(%arg0: i32) -> (i32, i32) {
    %c0_i32 = arith.constant 0 : i32
    %c0_i32_0 = arith.constant 0 : i32
    %c0_i32_1 = arith.constant 0 : i32
    return %c0_i32, %c0_i32_0 : i32, i32
  }
  func.func @transform_6(%arg0: i32) -> (i32, i32) {
    %c0_i32 = arith.constant 0 : i32
    %c0_i32_0 = arith.constant 0 : i32
    %c0_i32_1 = arith.constant 0 : i32
    return %c0_i32, %c0_i32_0 : i32, i32
  }
  func.func @transform_7(%arg0: i32) -> (i32, i32, i32) {
    %c0_i32 = arith.constant 0 : i32
    %c0_i32_0 = arith.constant 0 : i32
    %c0_i32_1 = arith.constant 0 : i32
    return %arg0, %c0_i32, %c0_i32_0 : i32, i32, i32
  }
}

</mosaic_0001>

<bundles_post_ra>
// kernel: tpu_custom_call.1
= control target key start
LH: loop header
LB: loop body
LE: loop exit
PB: predicated region body
PF: predicated region fallthrough
CT: control target
= control target key end

     0   :  { %12 = vsyncpa [#allocation5], 0  ;;  %s4150_s0 = inlined_call_operand.vmem [shape: f32[2,4,256], index: 0, kind: input, shape index: {}]   ;;  %s4151_s1 = inlined_call_operand.vmem [shape: bf16[9,8,4], index: 1, kind: input, shape index: {}]   ;;  %s4152_s2 = inlined_call_operand.vmem [shape: f32[8,1], index: 2, kind: input, shape index: {}]   ;;  %s4153_s3 = inlined_call_operand.vmem [shape: bf16[9,8,8], index: 3, kind: input, shape index: {}]   ;;  %s4154_s4 = inlined_call_operand.vmem [shape: f32[8,1], index: 4, kind: input, shape index: {}]   ;;  %s4155_s5 = inlined_call_operand.vmem [shape: bf16[8,4], index: 5, kind: input, shape index: {}]   ;;  %s4156_s6 = inlined_call_operand.vmem [shape: f32[8,1], index: 6, kind: input, shape index: {}]   ;;  %s4157_s7 = inlined_call_operand.hbm [shape: f32[2,8,256], index: 7, kind: output, shape index: {}]  }
   0x1   :  { %14 = vsyncpa [#allocation5 + $0x1], 0  ;;  %s3549_s24 = smov 0   ;;  %s3551_s25 = smov 0  }
   0x2   :  { %s3553_s26 = smov 0   ;;  %s3555_s27 = smov 0  }
   0x3 LB: > { %s3570_s28 = sadd.s32 4294967295, %s3463_s27   ;;  %s3055_s29 = sadd.s32 4294967294, %s3463_s27   ;;  %s3463_s27 = sphi %s3555_s27, %s4185_s27   ;;  %s3459_s26 = sphi %s3553_s26, %s4184_s26   ;;  %s3455_s25 = sphi %s3551_s25, %s4183_s25   ;;  %s3451_s24 = sphi %s3549_s24, %s4182_s24  }
   0x4   : > { %s3574_s30 = sadd.s32 1, %s3463_s27   ;;  %s179_s8 = sadd.s32 1, %s3459_s26 }
   0x5   : > { %s176_s9 = ssub.s32 %s3463_s27, %s3574_s30  ;;  %p189_p0 = scmp.ne.s32.totalorder %s3459_s26, %s3455_s25 }
   0x6   : > { %p177_p1 = scmp.eq.s32.totalorder %s176_s9, 0  ;;  %p190_p2 = scmp.eq.s32.totalorder %s3570_s28, 1 }
   0x7   : > { %p195_p3 = scmp.ne.s32.totalorder %s3455_s25, %s3451_s24  ;;  %p196_p4 = scmp.eq.s32.totalorder %s3055_s29, 1 }
   0x8   : > { %s3585_s10 = scalar_select %p177_p1, %s3459_s26, %s179_s8  }
   0x9   : > { %p3587_p5 = por %p190_p2, %p189_p0  ;;  %p3591_p6 = por %p196_p4, %p195_p3 }
   0xa   : > { %p3058_p7 = scmp.ge.s32.totalorder %s3463_s27, 1  ;;  %p240_p8 = scmp.lt.s32.totalorder %s3463_s27, 3 }
   0xc   : > { %p241_p9 = pnand %p3058_p7, %p240_p8 }
   0xd   : > { %p272_p10 = scmp.lt.s32.totalorder (!%p241_p9), %s3570_s28, 1  ;;  %s3465_s18 = smov (!%p241_p9), 112  }
   0xe   : > { %244 = sbr.rel (%p241_p9) target bundleno = 1371 (0x55b), region = 48  ;;  %s3466_s19 = smov (!%p241_p9), 80  }
   0xf   : > { %s3467_s20 = smov (!%p241_p9), 96   ;;  %s3468_s21 = smov (!%p241_p9), 32  }
  0x10   : > { %s3469_s22 = smov (!%p241_p9), 64   ;;  %s3470_s23 = smov (!%p241_p9), 48  }
  0x11   : > { %s3471_s29 = smov (!%p241_p9), 16   ;;  %s3474_s8 = smov (!%p241_p9), 19  }
  0x12   : > { %s3475_s9 = smov (!%p241_p9), 35   ;;  %s3478_s15 = smov (!%p241_p9), 55  }
  0x13   : > { %s273_s13 = scalar_select %p272_p10, %s3570_s28, 1  ;;  %v3472_v20 = vmov 1983009808   ;;  %v292_v22 = vlaneseq  ;;  %vm4158_vm0 = vcmask 130048   ;;  %vm278_vm1 = vcmask 148480  }
  0x14   : > { %v290_v21 = vunpack.c.l.s4 %v3472_v20  ;;  %v3473_v34 = vmov 0   ;;  %s3479_s16 = smov 91   ;;  %vm280_vm2 = vcmask 697752   ;;  %vm299_vm3 = vcmask 296088  }
  0x15   : > { %s3145_s14 = sshll.u32 %s273_s13, 3  ;;  %v293_v29 = vshrl.u32 %v292_v22, 7  ;;  %279 = vst.msk [vmem:[#allocation2] sm:$0x3] %vm278_vm1, %v3473_v34  ;;  %683 = vmatprep.mubr.bf16.mxu0 %v3473_v34  ;;  %3389 = vset.pattern.permute.xlu0 %v3473_v34  ;;  %s3476_s13 = smov 37   ;;  %vm319_vm4 = vcmask 443688  }
  0x16   : > { %s3602_s17 = scalar_lea.vmem %s4150_s0, %s3145_s14  ;;  %v291_v28 = vunpack.c.0.s8 %v290_v21  ;;  %3390 = vset.pattern.permute.xlu1 %v3473_v34  ;;  %s3477_s14 = smov 73   ;;  %281 = vst.msk [vmem:[#allocation2 + $0x4] sm:$0x3] %vm280_vm2, %v3473_v34  ;;  %vm339_vm5 = vcmask 591288   ;;  %vm359_vm6 = vcmask 738888   ;;  %vm379_vm7 = vcmask 886488  }
  0x17   : > { %v301_v0 = vld [vmem:[%s3602_s17] sm:$0xf]  ;;  %v463_v13 = vld [vmem:[%s3602_s17 + $0x4] sm:$0xf]  ;;  %vm422_vm8 = vcmask 1042424   ;;  %vm423_vm9 = vcmask 134146  }
  0x18   : > { %v341_v1 = vld [vmem:[%s3602_s17] sm:$0xf]  ;;  %v302_v3 = vpack.c.bf16 %v301_v0, %v301_v0  ;;  %v464_v15 = vpack.c.bf16 %v463_v13, %v463_v13  ;;  %v483_v16 = vld [vmem:[%s3602_s17 + $0x4] sm:$0xf]  ;;  %v3632_v37 = vsub.s32 %v291_v28, %v293_v29  ;;  %vm419_vm10 = vcmask 1039360   ;;  %vm424_vm12 = vmor %vm423_vm9, %vm422_vm8 }
  0x19   : > { %v321_v2 = vld [vmem:[%s3602_s17] sm:$0xf]  ;;  %v342_v4 = vpack.c.bf16 %v341_v1, %v341_v1  ;;  %v543_v17 = vld [vmem:[%s3602_s17 + $0x4] sm:$0xf]  ;;  %v484_v18 = vpack.c.bf16 %v483_v16, %v483_v16  ;;  %vm399_vm11 = vcmask 1034088   ;;  %vm444_vm13 = vcmask 279688  }
  0x1a   : > { %v401_v5 = vld [vmem:[%s3602_s17] sm:$0xf]  ;;  %304 = vrot.lane.b32.xlu0 %v302_v3, %s3465_s18  ;;  %v322_v6 = vpack.c.bf16 %v321_v2, %v321_v2  ;;  %v544_v19 = vpack.c.bf16 %v543_v17, %v543_v17  ;;  %v503_v23 = vld [vmem:[%s3602_s17 + $0x4] sm:$0xf]  ;;  %vm461_vm14 = vcmask 427288   ;;  %vm481_vm15 = vcmask 574888  }
  0x1b   : > { %344 = vrot.lane.b32.xlu1 %v342_v4, %s3466_s19  ;;  %v402_v7 = vpack.c.bf16 %v401_v5, %v401_v5  ;;  %v361_v8 = vld [vmem:[%s3602_s17] sm:$0xf]  ;;  %v523_v24 = vld [vmem:[%s3602_s17 + $0x4] sm:$0xf]  ;;  %v504_v26 = vpack.c.bf16 %v503_v23, %v503_v23  ;;  %vm501_vm1 = vcmask 722488   ;;  %vm521_vm2 = vcmask 870088  }
  0x1c   : > { %v381_v9 = vld [vmem:[%s3602_s17] sm:$0xf]  ;;  %v362_v10 = vpack.c.bf16 %v361_v8, %v361_v8  ;;  %v524_v27 = vpack.c.bf16 %v523_v24, %v523_v24  ;;  %v568_v30 = vld [vmem:[%s3602_s17 + $0x4] sm:$0xf]  ;;  %vm586_vm8 = vcmask 263288   ;;  %vm606_vm9 = vcmask 410888  }
  0x1d   : > { %v382_v11 = vpack.c.bf16 %v381_v9, %v381_v9  ;;  %v426_v12 = vld [vmem:[%s3602_s17] sm:$0xf]  ;;  %v588_v31 = vld [vmem:[%s3602_s17 + $0x4] sm:$0xf]  ;;  %v569_v35 = vpack.c.bf16 %v568_v30, %v568_v30 }
  0x1e   : > { %324 = vrot.lane.b32.xlu0 %v322_v6, %s3467_s20  ;;  %v427_v14 = vpack.c.bf16 %v426_v12, %v426_v12  ;;  %v282_v25 = vld [vmem:[%s3602_s17] sm:$0xf]  ;;  %v446_v33 = vld [vmem:[%s3602_s17 + $0x4] sm:$0xf]  ;;  %v589_v36 = vpack.c.bf16 %v588_v31, %v588_v31  ;;  %s3480_s17 = smov 127  }
  0x1f   : > { %404 = vrot.lane.b32.xlu1 %v402_v7, %s3468_s21  ;;  %v283_v32 = vpack.c.bf16 %v282_v25, %v282_v25  ;;  %v447_v39 = vpack.c.bf16 %v446_v33, %v446_v33 }
  0x21   : > { %v287_v38 = vsel %vm4158_vm0, %v283_v32, 0  ;;  %v449_v41 = vsel %vm4158_vm0, %v447_v39, 0 }
  0x22   : > { %364 = vrot.lane.b32.xlu0 %v362_v10, %s3469_s22  ;;  %v295_v40 = vrot.slane %v287_v38, %v3632_v37  ;;  %v457_v42 = vrot.slane %v449_v41, %v3632_v37 }
  0x23   : > { %384 = vrot.lane.b32.xlu1 %v382_v11, %s3470_s23 }
  0x26   : > { %429 = vrot.lane.b32.xlu0 %v427_v14, %s3471_s29 }
  0x27   : > { %466 = vrot.lane.b32.xlu1 %v464_v15, %s3465_s18 }
  0x2a   : > { %486 = vrot.lane.b32.xlu0 %v484_v18, %s3467_s20  ;;  %s3482_s20 = smov 109  }
  0x2b   : > { %546 = vrot.lane.b32.xlu1 %v544_v19, %s3470_s23  ;;  %s3485_s23 = smov 125  }
  0x2e   : > { %506 = vrot.lane.b32.xlu0 %v504_v26, %s3466_s19  ;;  %s3481_s19 = smov 17  }
  0x2f   : > { %526 = vrot.lane.b32.xlu1 %v524_v27, %s3469_s22  ;;  %s3484_s22 = smov 71  }
  0x32   : > { %571 = vrot.lane.b32.xlu0 %v569_v35, %s3468_s21  ;;  %s3483_s21 = smov 53  }
  0x33   : > { %591 = vrot.lane.b32.xlu1 %v589_v36, %s3471_s29  ;;  %s3486_s29 = smov 89  }
  0x36   : > { %296 = vrot.lane.b32.xlu0 %v295_v40, %s3474_s8 }
  0x3a   : > { %458 = vrot.lane.b32.xlu0 %v457_v42, %s3475_s9  ;;  %s3487_s9 = smov 107  }
  0x8c   : > { %v305_v43 = vpop.permute.xlu0 %304 }
  0x8d   : > { %v345_v44 = vpop.permute.xlu1 %344  ;;  %v307_v45 = vsel %vm4158_vm0, %v305_v43, 0 }
  0x8e   : > { %v347_v46 = vsel %vm4158_vm0, %v345_v44, 0  ;;  %v315_v47 = vrot.slane %v307_v45, %v3632_v37  ;;  %v3490_v44 = vmov 0.0  }
  0x8f   : > { %v355_v48 = vrot.slane %v347_v46, %v3632_v37  ;;  %3187 = vmatprep.subr.bf16.mxu1 %v3490_v44 }
  0x90   : > { %316 = vrot.lane.b32.xlu1 %v315_v47, %s3476_s13  ;;  %v325_v49 = vpop.permute.xlu0 %324  ;;  %s3488_s13 = smov 15  }
  0x91   : > { %v405_v50 = vpop.permute.xlu1 %404  ;;  %v327_v51 = vsel %vm4158_vm0, %v325_v49, 0 }
  0x92   : > { %v407_v52 = vsel %vm4158_vm0, %v405_v50, 0  ;;  %v335_v53 = vrot.slane %v327_v51, %v3632_v37 }
  0x93   : > { %v415_v54 = vrot.slane %v407_v52, %v3632_v37 }
  0x94   : > { %356 = vrot.lane.b32.xlu1 %v355_v48, %s3477_s14  ;;  %v365_v55 = vpop.permute.xlu0 %364  ;;  %336 = vrot.lane.b32.xlu0 %v335_v53, %s3478_s15  ;;  %s3489_s14 = smov 33   ;;  %s3492_s15 = smov 126  }
  0x95   : > { %v385_v56 = vpop.permute.xlu1 %384  ;;  %v367_v57 = vsel %vm4158_vm0, %v365_v55, 0 }
  0x96   : > { %v387_v58 = vsel %vm4158_vm0, %v385_v56, 0  ;;  %v375_v59 = vrot.slane %v367_v57, %v3632_v37 }
  0x97   : > { %v395_v60 = vrot.slane %v387_v58, %v3632_v37 }
  0x98   : > { %376 = vrot.lane.b32.xlu1 %v375_v59, %s3479_s16  ;;  %v430_v61 = vpop.permute.xlu0 %429  ;;  %416 = vrot.lane.b32.xlu0 %v415_v54, %s3480_s17 }
  0x99   : > { %v467_v62 = vpop.permute.xlu1 %466  ;;  %v432_v63 = vsel %vm4158_vm0, %v430_v61, 0 }
  0x9a   : > { %v469_v0 = vsel %vm4158_vm0, %v467_v62, 0  ;;  %v440_v1 = vrot.slane %v432_v63, %v3632_v37 }
  0x9b   : > { %v477_v2 = vrot.slane %v469_v0, %v3632_v37 }
  0x9c   : > { %441 = vrot.lane.b32.xlu1 %v440_v1, %s3481_s19  ;;  %396 = vrot.lane.b32.xlu0 %v395_v60, %s3482_s20  ;;  %v487_v3 = vpop.permute.xlu0 %486  ;;  %s3493_s19 = smov 110  }
  0x9d   : > { %v547_v4 = vpop.permute.xlu1 %546  ;;  %v489_v5 = vsel %vm4158_vm0, %v487_v3, 0 }
  0x9e   : > { %v549_v6 = vsel %vm4158_vm0, %v547_v4, 0  ;;  %v497_v7 = vrot.slane %v489_v5, %v3632_v37 }
  0x9f   : > { %v557_v8 = vrot.slane %v549_v6, %v3632_v37 }
  0xa0   : > { %478 = vrot.lane.b32.xlu1 %v477_v2, %s3483_s21  ;;  %v507_v9 = vpop.permute.xlu0 %506  ;;  %498 = vrot.lane.b32.xlu0 %v497_v7, %s3484_s22  ;;  %s3494_s21 = smov 108   ;;  %s3495_s22 = smov 92  }
  0xa1   : > { %v527_v10 = vpop.permute.xlu1 %526  ;;  %v509_v11 = vsel %vm4158_vm0, %v507_v9, 0 }
  0xa2   : > { %v529_v12 = vsel %vm4158_vm0, %v527_v10, 0  ;;  %v517_v13 = vrot.slane %v509_v11, %v3632_v37 }
  0xa3   : > { %v537_v14 = vrot.slane %v529_v12, %v3632_v37 }
  0xa4   : > { %558 = vrot.lane.b32.xlu1 %v557_v8, %s3485_s23  ;;  %v572_v15 = vpop.permute.xlu0 %571  ;;  %518 = vrot.lane.b32.xlu0 %v517_v13, %s3486_s29  ;;  %s3496_s23 = smov 90   ;;  %s3497_s29 = smov 100  }
  0xa5   : > { %v592_v16 = vpop.permute.xlu1 %591  ;;  %v574_v17 = vsel %vm4158_vm0, %v572_v15, 0 }
  0xa6   : > { %v594_v18 = vsel %vm4158_vm0, %v592_v16, 0  ;;  %v582_v19 = vrot.slane %v574_v17, %v3632_v37 }
  0xa7   : > { %v602_v20 = vrot.slane %v594_v18, %v3632_v37 }
  0xa8   : > { %538 = vrot.lane.b32.xlu1 %v537_v14, %s3487_s9  ;;  %583 = vrot.lane.b32.xlu0 %v582_v19, %s3488_s13  ;;  %v297_v21 = vpop.permute.xlu0 %296  ;;  %s3498_s13 = smov 114  }
  0xa9   : > { %300 = vst.msk [vmem:[#allocation2] sm:$0x3] %vm299_vm3, %v297_v21  ;;  %vm564_vm3 = vcmask 1042408   ;;  %v1755_v21 = vld [vmem:[%s4152_s2] sm:$0xff] }
  0xac   : > { %603 = vrot.lane.b32.xlu1 %v602_v20, %s3489_s14  ;;  %v459_v23 = vpop.permute.xlu0 %458  ;;  %s3499_s14 = smov 124  }
 0x102   : > { %v317_v24 = vpop.permute.xlu1 %316 }
 0x103   : > { %320 = vst.msk [vmem:[#allocation2] sm:$0x3] %vm319_vm4, %v317_v24  ;;  %vm565_vm4 = vcmask 117762  }
 0x106   : > { %v357_v25 = vpop.permute.xlu1 %356  ;;  %v337_v26 = vpop.permute.xlu0 %336 }
 0x107   : > { %340 = vst.msk [vmem:[#allocation2] sm:$0x3] %vm339_vm5, %v337_v26  ;;  %vm561_vm5 = vcmask 1022976  }
 0x108   : > { %360 = vst.msk [vmem:[#allocation2] sm:$0x3] %vm359_vm6, %v357_v25  ;;  %vm541_vm6 = vcmask 1017688  }
 0x10a   : > { %v377_v27 = vpop.permute.xlu1 %376  ;;  %v417_v28 = vpop.permute.xlu0 %416 }
 0x10b   : > { %380 = vst.msk [vmem:[#allocation2] sm:$0x3] %vm379_vm7, %v377_v27  ;;  %v418_v29 = vrot.slane %v417_v28, 6  ;;  %vm566_vm7 = vmor %vm565_vm4, %vm564_vm3  ;;  %vm1351_vm3 = vcmask 752640   ;;  %vm4162_vm4 = vcmask 744448  }
 0x10d   : > { %v420_v32 = vsel %vm419_vm10, %v418_v29, %v417_v28 }
 0x10e   : > { %v442_v30 = vpop.permute.xlu1 %441  ;;  %v397_v31 = vpop.permute.xlu0 %396 }
 0x10f   : > { %400 = vst.msk [vmem:[#allocation2] sm:$0x3] %vm399_vm11, %v397_v31  ;;  %vm3491_vm11 = vmmov 0   ;;  %v3062_v31 = vld [vmem:[%s4151_s1 + $0x4] sm:$0xf] }
 0x110   : > { %425 = vst.msk [vmem:[#allocation2] sm:$0xf] %vm424_vm12, %v420_v32  ;;  %3189 = vmatprep.mubr.msk.bf16.mxu1 %vm3491_vm11, %v3490_v44  ;;  %vm4160_vm12 = vcmask 1041408  }
 0x111   : > { %445 = vst.msk [vmem:[#allocation2 + $0x2] sm:$0x3] %vm444_vm13, %v442_v30  ;;  %vm4159_vm13 = vcmask 31744  }
 0x112   : > { %v479_v33 = vpop.permute.xlu1 %478  ;;  %462 = vst.msk [vmem:[#allocation2 + $0x2] sm:$0x3] %vm461_vm14, %v459_v23  ;;  %v499_v35 = vpop.permute.xlu0 %498  ;;  %vm851_vm14 = vcmask 1031168  }
 0x113   : > { %482 = vst.msk [vmem:[#allocation2 + $0x2] sm:$0x3] %vm481_vm15, %v479_v33  ;;  %vm976_vm15 = vcmask 900096  }
 0x114   : > { %502 = vst.msk [vmem:[#allocation2 + $0x2] sm:$0x3] %vm501_vm1, %v499_v35  ;;  %vm1101_vm1 = vcmask 891904  }
 0x116   : > { %v559_v36 = vpop.permute.xlu1 %558  ;;  %v519_v38 = vpop.permute.xlu0 %518 }
 0x117   : > { %v560_v39 = vrot.slane %v559_v36, 6  ;;  %522 = vst.msk [vmem:[#allocation2 + $0x2] sm:$0x3] %vm521_vm2, %v519_v38  ;;  %vm1226_vm2 = vcmask 883712  }
 0x119   : > { %v562_v42 = vsel %vm561_vm5, %v560_v39, %v559_v36  ;;  %vm4161_vm5 = vcmask 736256  }
 0x11a   : > { %v539_v40 = vpop.permute.xlu1 %538  ;;  %v584_v41 = vpop.permute.xlu0 %583 }
 0x11b   : > { %542 = vst.msk [vmem:[#allocation2 + $0x2] sm:$0x3] %vm541_vm6, %v539_v40  ;;  %vm1776_vm6 = vcmask 150528  }
 0x11c   : > { %567 = vst.msk [vmem:[#allocation2 + $0x2] sm:$0xf] %vm566_vm7, %v562_v42 }
 0x11d   : > { %587 = vst.msk [vmem:[#allocation2 + $0x4] sm:$0x3] %vm586_vm8, %v584_v41  ;;  %v608_v41 = vld [vmem:[%s4151_s1] sm:$0xf] }
 0x11e   : > { %v604_v43 = vpop.permute.xlu1 %603  ;;  %1777 = vst.msk [vmem:[#allocation3] sm:$0xf] %vm1776_vm6, %v3473_v34 }
 0x11f   : > { %607 = vst.msk [vmem:[#allocation2 + $0x4] sm:$0x3] %vm606_vm9, %v604_v43 }
 0x126   : > { %v609_v45 = vld [vmem:[#allocation2] sm:$0x3f] }
 0x127   : > { %v3679_v46 = vrot.slane %v609_v45, %v3632_v37  ;;  %v613_v47 = vcombine.high %v609_v45, %v609_v45  ;;  %v827_v48 = vld [vmem:[#allocation2] sm:$0x3f] }
 0x128   : > { %v836_v51 = vrot.slane %v827_v48, %v3632_v37  ;;  %v829_v52 = vcombine.high %v827_v48, %v827_v48  ;;  %v952_v53 = vld [vmem:[#allocation2] sm:$0x3f] }
 0x129   : > { %629 = vrot.lane.b32.xlu0 %v3679_v46, %s3480_s17  ;;  %v3685_v49 = vcombine.high %v3679_v46, %v3679_v46  ;;  %v3690_v50 = vrot.slane %v613_v47, %v3632_v37  ;;  %v961_v56 = vrot.slane %v952_v53, %v3632_v37  ;;  %v954_v57 = vcombine.high %v952_v53, %v952_v53  ;;  %v1077_v58 = vld [vmem:[#allocation2] sm:$0x3f] }
 0x12a   : > { %v844_v54 = vcombine.high %v836_v51, %v836_v51  ;;  %v843_v55 = vrot.slane %v829_v52, %v3632_v37  ;;  %v1086_v61 = vrot.slane %v1077_v58, %v3632_v37  ;;  %v1079_v62 = vcombine.high %v1077_v58, %v1077_v58  ;;  %v1202_v63 = vld [vmem:[#allocation2] sm:$0x3f] }
 0x12b   : > { %631 = vrot.lane.b32.xlu1 %v3685_v49, %s3480_s17  ;;  %v969_v59 = vcombine.high %v961_v56, %v961_v56  ;;  %v968_v60 = vrot.slane %v954_v57, %v3632_v37  ;;  %v1211_v2 = vrot.slane %v1202_v63, %v3632_v37  ;;  %v1204_v3 = vcombine.high %v1202_v63, %v1202_v63  ;;  %v1327_v4 = vld [vmem:[#allocation2] sm:$0x3f] }
 0x12c   : > { %v1094_v0 = vcombine.high %v1086_v61, %v1086_v61  ;;  %v1093_v1 = vrot.slane %v1079_v62, %v3632_v37  ;;  %v1336_v7 = vrot.slane %v1327_v4, %v3632_v37  ;;  %v1329_v8 = vcombine.high %v1327_v4, %v1327_v4  ;;  %v1452_v9 = vld [vmem:[#allocation2] sm:$0x3f] }
 0x12d   : > { %633 = vrot.lane.b32.xlu0 %v3690_v50, %s3480_s17  ;;  %v1219_v5 = vcombine.high %v1211_v2, %v1211_v2  ;;  %v1218_v6 = vrot.slane %v1204_v3, %v3632_v37  ;;  %v1461_v12 = vrot.slane %v1452_v9, %v3632_v37  ;;  %v1454_v13 = vcombine.high %v1452_v9, %v1452_v9  ;;  %v1577_v14 = vld [vmem:[#allocation2] sm:$0x3f]  ;;  %v3077_v3 = vld [vmem:[%s4151_s1 + $0x10] sm:$0xf] }
 0x12e   : > { %v1344_v10 = vcombine.high %v1336_v7, %v1336_v7  ;;  %v1343_v11 = vrot.slane %v1329_v8, %v3632_v37  ;;  %v1586_v17 = vrot.slane %v1577_v14, %v3632_v37  ;;  %v1579_v18 = vcombine.high %v1577_v14, %v1577_v14 }
 0x12f   : > { %845 = vrot.lane.b32.xlu1 %v836_v51, %s3492_s15  ;;  %v1469_v15 = vcombine.high %v1461_v12, %v1461_v12  ;;  %v1468_v16 = vrot.slane %v1454_v13, %v3632_v37  ;;  %v742_v33 = vsel %vm4160_vm12, %v3690_v50, 0  ;;  %v736_v36 = vsel %vm4160_vm12, %v3679_v46, 0  ;;  %v3069_v51 = vld [vmem:[%s4151_s1 + $0x8] sm:$0xf] }
 0x130   : > { %v1594_v19 = vcombine.high %v1586_v17, %v1586_v17  ;;  %v1593_v20 = vrot.slane %v1579_v18, %v3632_v37 }
 0x131   : > { %847 = vrot.lane.b32.xlu0 %v844_v54, %s3492_s15 }
 0x133   : > { %849 = vrot.lane.b32.xlu1 %v843_v55, %s3492_s15 }
 0x135   : > { %970 = vrot.lane.b32.xlu0 %v961_v56, %s3493_s19 }
 0x137   : > { %972 = vrot.lane.b32.xlu1 %v969_v59, %s3493_s19  ;;  %v3073_v59 = vld [vmem:[%s4151_s1 + $0xc] sm:$0xf] }
 0x139   : > { %974 = vrot.lane.b32.xlu0 %v968_v60, %s3493_s19 }
 0x13b   : > { %1095 = vrot.lane.b32.xlu1 %v1086_v61, %s3482_s20 }
 0x13d   : > { %1097 = vrot.lane.b32.xlu0 %v1094_v0, %s3482_s20 }
 0x13f   : > { %1099 = vrot.lane.b32.xlu1 %v1093_v1, %s3482_s20 }
 0x141   : > { %1220 = vrot.lane.b32.xlu0 %v1211_v2, %s3494_s21 }
 0x143   : > { %1222 = vrot.lane.b32.xlu1 %v1219_v5, %s3494_s21 }
 0x145   : > { %1224 = vrot.lane.b32.xlu0 %v1218_v6, %s3494_s21 }
 0x147   : > { %1345 = vrot.lane.b32.xlu1 %v1336_v7, %s3495_s22 }
 0x149   : > { %1347 = vrot.lane.b32.xlu0 %v1344_v10, %s3495_s22  ;;  %v3081_v10 = vld [vmem:[%s4151_s1 + $0x14] sm:$0xf] }
 0x14b   : > { %1349 = vrot.lane.b32.xlu1 %v1343_v11, %s3495_s22 }
 0x14d   : > { %1470 = vrot.lane.b32.xlu0 %v1461_v12, %s3479_s16 }
 0x14f   : > { %1472 = vrot.lane.b32.xlu1 %v1469_v15, %s3479_s16 }
 0x151   : > { %1474 = vrot.lane.b32.xlu0 %v1468_v16, %s3479_s16 }
 0x153   : > { %1595 = vrot.lane.b32.xlu1 %v1586_v17, %s3496_s23  ;;  %v3085_v17 = vld [vmem:[%s4151_s1 + $0x18] sm:$0xf] }
 0x155   : > { %1597 = vrot.lane.b32.xlu0 %v1594_v19, %s3496_s23 }
 0x157   : > { %1599 = vrot.lane.b32.xlu1 %v1593_v20, %s3496_s23 }
 0x159   : > { %1758 = vperm.xlu0 %3389, %v1755_v21  }
 0x19b   : > { %v630_v23 = vpop.permute.xlu0 %629 }
 0x19d   : > { %v632_v24 = vpop.permute.xlu1 %631 }
 0x19e   : > { %v635_v25 = vsel %vm419_vm10, %v630_v23, %v632_v24 }
 0x19f   : > { %v634_v26 = vpop.permute.xlu0 %633  ;;  %v643_v30 = vsel %vm4160_vm12, %v635_v25, 0  ;;  %v3089_v25 = vld [vmem:[%s4151_s1 + $0x1c] sm:$0xf] }
 0x1a0   : > { %v636_v27 = vsel %vm419_vm10, %v632_v24, %v634_v26  ;;  %v649_v28 = vsel %vm4160_vm12, %v634_v26, 0 }
 0x1a1   : > { %v846_v29 = vpop.permute.xlu1 %845  ;;  %3063 = vmatprep.subr.msk.bf16.mxu0 %vm4160_vm12, %v636_v27  ;;  %3188 = vmatpush3.bf16.msra.mxu1 %v649_v28 }
 0x1a2   : > { %666 = vmatpush1.bf16.msra.mxu0 %v643_v30  ;;  %3193 = vmatprep.subr.bf16.mxu1 %v3490_v44 }
 0x1a3   : > { %3066 = vmatprep.subr.msk.bf16.mxu0 %vm4160_vm12, %v3685_v49  ;;  %v848_v32 = vpop.permute.xlu0 %847 }
 0x1a4   : > { %3190 = vmatmul.mubr.msk.bf16.vlgmr.msra.gmra.mxu1 %vm4159_vm13, %v3062_v31  ;;  %v852_v42 = vsel %vm851_vm14, %v846_v29, %v848_v32  ;;  %v3093_v29 = vld [vmem:[%s4151_s1 + $0x20] sm:$0xf] }
 0x1a5   : > { %v850_v35 = vpop.permute.xlu1 %849  ;;  %3064 = vmatmul.mubr.msk.bf16.vlgmr.msra.gmra.mxu0 %vm4159_vm13, %v3062_v31  ;;  %3194 = vmatpush3.bf16.msra.mxu1 %v742_v33  ;;  %v858_v47 = vsel %vm4160_vm12, %v852_v42, 0 }
 0x1a6   : > { %v853_v38 = vsel %vm851_vm14, %v848_v32, %v850_v35  ;;  %759 = vmatpush1.bf16.msra.mxu0 %v736_v36  ;;  %3195 = vmatprep.mubr.msk.bf16.mxu1 %vm3491_vm11, %v3490_v44  ;;  %v864_v45 = vsel %vm4160_vm12, %v850_v35, 0 }
 0x1a7   : > { %3070 = vmatprep.subr.msk.bf16.mxu0 %vm4160_vm12, %v853_v38  ;;  %v971_v39 = vpop.permute.xlu0 %970  ;;  %3199 = vmatprep.subr.bf16.mxu1 %v3490_v44 }
 0x1a8   : > { %776 = vmatprep.mubr.bf16.mxu0 %v3473_v34 }
 0x1a9   : > { %v973_v40 = vpop.permute.xlu1 %972 }
 0x1aa   : > { %v977_v52 = vsel %vm976_vm15, %v971_v39, %v973_v40 }
 0x1ab   : > { %v975_v43 = vpop.permute.xlu0 %974  ;;  %v983_v55 = vsel %vm4160_vm12, %v977_v52, 0 }
 0x1ac   : > { %v978_v46 = vsel %vm976_vm15, %v973_v40, %v975_v43  ;;  %3196 = vmatmul.mubr.msk.bf16.vlgmr.msra.gmra.mxu1 %vm4159_vm13, %v608_v41  ;;  %v989_v54 = vsel %vm4160_vm12, %v975_v43, 0 }
 0x1ad   : > { %3200 = vmatpush3.bf16.msra.mxu1 %v864_v45  ;;  %v1096_v48 = vpop.permute.xlu1 %1095  ;;  %3067 = vmatmul.mubr.msk.bf16.vlgmr.msra.gmra.mxu0 %vm4159_vm13, %v608_v41 }
 0x1ae   : > { %881 = vmatpush1.bf16.msra.mxu0 %v858_v47  ;;  %3201 = vmatprep.mubr.msk.bf16.mxu1 %vm3491_vm11, %v3490_v44 }
 0x1af   : > { %3074 = vmatprep.subr.msk.bf16.mxu0 %vm4160_vm12, %v978_v46  ;;  %v1098_v49 = vpop.permute.xlu0 %1097  ;;  %3205 = vmatprep.subr.bf16.mxu1 %v3490_v44 }
 0x1b0   : > { %898 = vmatprep.mubr.bf16.mxu0 %v3473_v34  ;;  %v1102_v60 = vsel %vm1101_vm1, %v1096_v48, %v1098_v49 }
 0x1b1   : > { %v1100_v50 = vpop.permute.xlu1 %1099  ;;  %v1108_v63 = vsel %vm4160_vm12, %v1102_v60, 0 }
 0x1b2   : > { %v1103_v57 = vsel %vm1101_vm1, %v1098_v49, %v1100_v50  ;;  %v1114_v62 = vsel %vm4160_vm12, %v1100_v50, 0 }
 0x1b3   : > { %v1221_v53 = vpop.permute.xlu0 %1220 }
 0x1b4   : > { %3202 = vmatmul.mubr.msk.bf16.vlgmr.msra.gmra.mxu1 %vm4159_vm13, %v3069_v51 }
 0x1b5   : > { %3206 = vmatpush3.bf16.msra.mxu1 %v989_v54  ;;  %v1223_v56 = vpop.permute.xlu1 %1222  ;;  %3071 = vmatmul.mubr.msk.bf16.vlgmr.msra.gmra.mxu0 %vm4159_vm13, %v3069_v51 }
 0x1b6   : > { %1006 = vmatpush1.bf16.msra.mxu0 %v983_v55  ;;  %3207 = vmatprep.mubr.msk.bf16.mxu1 %vm3491_vm11, %v3490_v44  ;;  %v1227_v4 = vsel %vm1226_vm2, %v1221_v53, %v1223_v56 }
 0x1b7   : > { %3078 = vmatprep.subr.msk.bf16.mxu0 %vm4160_vm12, %v1103_v57  ;;  %3211 = vmatprep.subr.bf16.mxu1 %v3490_v44  ;;  %v1225_v58 = vpop.permute.xlu0 %1224  ;;  %v1233_v6 = vsel %vm4160_vm12, %v1227_v4, 0 }
 0x1b8   : > { %1023 = vmatprep.mubr.bf16.mxu0 %v3473_v34  ;;  %v1228_v0 = vsel %vm1226_vm2, %v1223_v56, %v1225_v58  ;;  %v1239_v5 = vsel %vm4160_vm12, %v1225_v58, 0 }
 0x1b9   : > { %v1346_v61 = vpop.permute.xlu1 %1345 }
 0x1bb   : > { %v1348_v1 = vpop.permute.xlu0 %1347 }
 0x1bc   : > { %3208 = vmatmul.mubr.msk.bf16.vlgmr.msra.gmra.mxu1 %vm4159_vm13, %v3073_v59  ;;  %v1352_v11 = vsel %vm1351_vm3, %v1346_v61, %v1348_v1 }
 0x1bd   : > { %3212 = vmatpush3.bf16.msra.mxu1 %v1114_v62  ;;  %3075 = vmatmul.mubr.msk.bf16.vlgmr.msra.gmra.mxu0 %vm4159_vm13, %v3073_v59  ;;  %v1350_v2 = vpop.permute.xlu1 %1349  ;;  %v1358_v14 = vsel %vm4160_vm12, %v1352_v11, 0 }
 0x1be   : > { %1131 = vmatpush1.bf16.msra.mxu0 %v1108_v63  ;;  %3213 = vmatprep.mubr.msk.bf16.mxu1 %vm3491_vm11, %v3490_v44  ;;  %v1353_v8 = vsel %vm1351_vm3, %v1348_v1, %v1350_v2  ;;  %v1364_v13 = vsel %vm4160_vm12, %v1350_v2, 0 }
 0x1bf   : > { %3082 = vmatprep.subr.msk.bf16.mxu0 %vm4160_vm12, %v1228_v0  ;;  %3217 = vmatprep.subr.bf16.mxu1 %v3490_v44  ;;  %v1471_v7 = vpop.permute.xlu0 %1470 }
 0x1c0   : > { %1148 = vmatprep.mubr.bf16.mxu0 %v3473_v34 }
 0x1c1   : > { %v1473_v9 = vpop.permute.xlu1 %1472 }
 0x1c2   : > { %v1477_v18 = vsel %vm4162_vm4, %v1471_v7, %v1473_v9 }
 0x1c3   : > { %v1475_v12 = vpop.permute.xlu0 %1474  ;;  %v1483_v21 = vsel %vm4160_vm12, %v1477_v18, 0 }
 0x1c4   : > { %3214 = vmatmul.mubr.msk.bf16.vlgmr.msra.gmra.mxu1 %vm4159_vm13, %v3077_v3  ;;  %v1478_v16 = vsel %vm4162_vm4, %v1473_v9, %v1475_v12  ;;  %v1489_v20 = vsel %vm4160_vm12, %v1475_v12, 0  ;;  %vm1805_vm4 = vcmask 412672  }
 0x1c5   : > { %3218 = vmatpush3.bf16.msra.mxu1 %v1239_v5  ;;  %3079 = vmatmul.mubr.msk.bf16.vlgmr.msra.gmra.mxu0 %vm4159_vm13, %v3077_v3  ;;  %v1596_v15 = vpop.permute.xlu1 %1595  ;;  %v1701_v5 = vand.u32 127, %v292_v22 }
 0x1c6   : > { %1256 = vmatpush1.bf16.msra.mxu0 %v1233_v6  ;;  %3219 = vmatprep.mubr.msk.bf16.mxu1 %vm3491_vm11, %v3490_v44 }
 0x1c7   : > { %3086 = vmatprep.subr.msk.bf16.mxu0 %vm4160_vm12, %v1353_v8  ;;  %3223 = vmatprep.subr.bf16.mxu1 %v3490_v44  ;;  %v1598_v23 = vpop.permute.xlu0 %1597  ;;  %v1702_v9 = vadd.s32 128, %v1701_v5  ;;  %v1703_v11 = vadd.s32 256, %v1701_v5 }
 0x1c8   : > { %1273 = vmatprep.mubr.bf16.mxu0 %v3473_v34  ;;  %v1602_v26 = vsel %vm4161_vm5, %v1596_v15, %v1598_v23 }
 0x1c9   : > { %v1600_v19 = vpop.permute.xlu1 %1599  ;;  %v1608_v28 = vsel %vm4160_vm12, %v1602_v26, 0 }
 0x1ca   : > { %v1603_v24 = vsel %vm4161_vm5, %v1598_v23, %v1600_v19  ;;  %v1614_v27 = vsel %vm4160_vm12, %v1600_v19, 0 }
 0x1cc   : > { %3220 = vmatmul.mubr.msk.bf16.vlgmr.msra.gmra.mxu1 %vm4159_vm13, %v3081_v10 }
 0x1cd   : > { %3224 = vmatpush3.bf16.msra.mxu1 %v1364_v13  ;;  %3083 = vmatmul.mubr.msk.bf16.vlgmr.msra.gmra.mxu0 %vm4159_vm13, %v3081_v10 }
 0x1ce   : > { %1381 = vmatpush1.bf16.msra.mxu0 %v1358_v14  ;;  %3225 = vmatprep.mubr.msk.bf16.mxu1 %vm3491_vm11, %v3490_v44  ;;  %v3865_v14 = vmul.u32.u64.low 3817748708, %v1701_v5  ;;  %v3866_v15 = vmul.u32.u64.high 3817748708, %v1701_v5, %v3865_v14 }
 0x1cf   : > { %3090 = vmatprep.subr.msk.bf16.mxu0 %vm4160_vm12, %v1478_v16  ;;  %3229 = vmatprep.subr.bf16.mxu1 %v3490_v44 }
 0x1d0   : > { %1398 = vmatprep.mubr.bf16.mxu0 %v3473_v34 }
 0x1d4   : > { %3226 = vmatmul.mubr.msk.bf16.vlgmr.msra.gmra.mxu1 %vm4159_vm13, %v3085_v17 }
 0x1d5   : > { %3230 = vmatpush3.bf16.msra.mxu1 %v1489_v20  ;;  %3087 = vmatmul.mubr.msk.bf16.vlgmr.msra.gmra.mxu0 %vm4159_vm13, %v3085_v17  ;;  %v3868_v17 = vmul.u32.u64.low 3817748708, %v1702_v9  ;;  %v3869_v18 = vmul.u32.u64.high 3817748708, %v1702_v9, %v3868_v17 }
 0x1d6   : > { %1506 = vmatpush1.bf16.msra.mxu0 %v1483_v21  ;;  %3231 = vmatprep.mubr.msk.bf16.mxu1 %vm3491_vm11, %v3490_v44  ;;  %v3871_v20 = vmul.u32.u64.low 3817748708, %v1703_v11  ;;  %v3872_v21 = vmul.u32.u64.high 3817748708, %v1703_v11, %v3871_v20 }
 0x1d7   : > { %3094 = vmatprep.subr.msk.bf16.mxu0 %vm4160_vm12, %v1603_v24  ;;  %3235 = vmatprep.subr.bf16.mxu1 %v3490_v44 }
 0x1d8   : > { %1523 = vmatprep.mubr.bf16.mxu0 %v3473_v34 }
 0x1dc   : > { %3232 = vmatmul.mubr.msk.bf16.vlgmr.msra.gmra.mxu1 %vm4159_vm13, %v3089_v25 }
 0x1dd   : > { %3236 = vmatpush3.bf16.msra.mxu1 %v1614_v27  ;;  %3091 = vmatmul.mubr.msk.bf16.vlgmr.msra.gmra.mxu0 %vm4159_vm13, %v3089_v25 }
 0x1de   : > { %1631 = vmatpush1.bf16.msra.mxu0 %v1608_v28  ;;  %3237 = vmatprep.mubr.msk.bf16.mxu1 %vm3491_vm11, %v3490_v44  ;;  %v1710_v28 = vshrl.u32 %v3866_v15, 4 }
 0x1df   : > { %1648 = vmatprep.mubr.bf16.mxu0 %v3473_v34  ;;  %3241 = vmatprep.subr.bf16.mxu1 %v3490_v44 }
 0x1e4   : > { %3238 = vmatmul.mubr.msk.bf16.vlgmr.msra.gmra.mxu1 %vm4159_vm13, %v3093_v29 }
 0x1e5   : > { %3095 = vmatmul.mubr.msk.bf16.vlgmr.msra.gmra.mxu0 %vm4159_vm13, %v3093_v29  ;;  %3243 = vmatprep.mubr.msk.bf16.mxu1 %vm3491_vm11, %v3490_v44 }
 0x1e6   : > { %1874 = vmatprep.mubr.bf16.mxu0 %v3473_v34 }
 0x264   : > { %v726_v30 = vpop.f32.mrf.mxu1 }
 0x265   : > { %v3860_v31 = vpop.f32.mrf.mxu0 }
 0x266   : > { %v3191_v32 = vpop.f32.mrf.mxu1 }
 0x267   : > { %v3862_v33 = vpop.f32.mrf.mxu0  ;;  %v1721_v32 = vshrl.u32 %v3869_v18, 4 }
 0x268   : > { %v729_v35 = vpop.f32.mrf.mxu1 }
 0x269   : > { %v689_v36 = vpop.f32.mrf.mxu0 }
 0x26a   : > { %v3192_v38 = vpop.f32.mrf.mxu1 }
 0x26b   : > { %v690_v39 = vpop.f32.mrf.mxu0  ;;  %v1732_v38 = vshrl.u32 %v3872_v21, 4 }
 0x26c   : > { %v819_v40 = vpop.f32.mrf.mxu1 }
 0x26d   : > { %v778_v41 = vpop.f32.mrf.mxu0  ;;  %v820_v35 = vadd.f32 %v819_v40, %v726_v30 }
 0x26e   : > { %v3197_v42 = vpop.f32.mrf.mxu1  ;;  %v779_v39 = vadd.f32 %v778_v41, %v3860_v31 }
 0x26f   : > { %v780_v43 = vpop.f32.mrf.mxu0 }
 0x270   : > { %v822_v45 = vpop.f32.mrf.mxu1 }
 0x271   : > { %v782_v46 = vpop.f32.mrf.mxu0 }
 0x272   : > { %v3198_v47 = vpop.f32.mrf.mxu1 }
 0x273   : > { %v783_v48 = vpop.f32.mrf.mxu0  ;;  %v1711_v47 = vmul.u32 18, %v1710_v28 }
 0x274   : > { %v941_v49 = vpop.f32.mrf.mxu1  ;;  %v781_v48 = vadd.f32 %v780_v43, %v3862_v33 }
 0x275   : > { %v900_v50 = vpop.f32.mrf.mxu0  ;;  %v949_v45 = vadd.f32 %v941_v49, %v820_v35 }
 0x276   : > { %v3203_v51 = vpop.f32.mrf.mxu1 }
 0x277   : > { %v902_v52 = vpop.f32.mrf.mxu0  ;;  %v947_v51 = vadd.f32 %v900_v50, %v779_v39 }
 0x278   : > { %v944_v53 = vpop.f32.mrf.mxu1 }
 0x279   : > { %v904_v54 = vpop.f32.mrf.mxu0 }
 0x27a   : > { %v3204_v55 = vpop.f32.mrf.mxu1  ;;  %v1722_v54 = vmul.u32 18, %v1721_v32 }
 0x27b   : > { %v905_v56 = vpop.f32.mrf.mxu0 }
 0x27c   : > { %v1066_v57 = vpop.f32.mrf.mxu1  ;;  %v1723_v49 = vsub.s32 %v1702_v9, %v1722_v54 }
 0x27d   : > { %v1025_v58 = vpop.f32.mrf.mxu0  ;;  %v1074_v55 = vadd.f32 %v1066_v57, %v949_v45 }
 0x27e   : > { %v3209_v59 = vpop.f32.mrf.mxu1  ;;  %vm1738_vm9 = vcmp.ne.s32.totalorder %v1723_v49, 0  ;;  %vm1741_vm6 = vcmp.lt.s32.totalorder %v1723_v49, 0 }
 0x27f   : > { %v1027_v60 = vpop.f32.mrf.mxu0  ;;  %v1733_v59 = vmul.u32 18, %v1732_v38  ;;  %vm3884_vm5 = vmand %vm1741_vm6, %vm1738_vm9  ;;  %vm1802_vm9 = vcmask 1047556   ;;  %vm1796_vm6 = vcmask 154624  }
 0x280   : > { %v1069_v61 = vpop.f32.mrf.mxu1 }
 0x281   : > { %v1029_v62 = vpop.f32.mrf.mxu0  ;;  %v948_v61 = vadd.f32 %v902_v52, %v781_v48 }
 0x282   : > { %v3210_v63 = vpop.f32.mrf.mxu1  ;;  %v1072_v62 = vadd.f32 %v1025_v58, %v947_v51 }
 0x283   : > { %v1030_v0 = vpop.f32.mrf.mxu0 }
 0x284   : > { %v1191_v1 = vpop.f32.mrf.mxu1  ;;  %v1712_v0 = vsub.s32 %v1701_v5, %v1711_v47 }
 0x285   : > { %v1150_v2 = vpop.f32.mrf.mxu0  ;;  %v1199_v40 = vadd.f32 %v1191_v1, %v1074_v55 }
 0x286   : > { %v3215_v3 = vpop.f32.mrf.mxu1  ;;  %v1197_v31 = vadd.f32 %v1150_v2, %v1072_v62  ;;  %vm1737_vm7 = vcmp.ne.s32.totalorder %v1712_v0, 0  ;;  %vm1740_vm8 = vcmp.lt.s32.totalorder %v1712_v0, 0  ;;  %v1746_v2 = vadd.s32 18, %v1712_v0 }
 0x287   : > { %v1152_v4 = vpop.f32.mrf.mxu0  ;;  %v1073_v3 = vadd.f32 %v1027_v60, %v948_v61  ;;  %vm3879_vm13 = vmand %vm1740_vm8, %vm1737_vm7  ;;  %vm1778_vm8 = vcmask 699800  }
 0x288   : > { %v1194_v6 = vpop.f32.mrf.mxu1  ;;  %1779 = vst.msk [vmem:[#allocation3 + $0x8] sm:$0xf] %vm1778_vm8, %v3473_v34 }
 0x289   : > { %v1154_v7 = vpop.f32.mrf.mxu0  ;;  %v1198_v33 = vadd.f32 %v1152_v4, %v1073_v3  ;;  %v2767_v3 = vld [vmem:[#allocation2] sm:$0x3f] }
 0x28a   : > { %v3216_v8 = vpop.f32.mrf.mxu1 }
 0x28b   : > { %v1155_v10 = vpop.f32.mrf.mxu0  ;;  %v1734_v8 = vsub.s32 %v1703_v11, %v1733_v59  ;;  %v1747_v11 = vadd.s32 18, %v1723_v49 }
 0x28c   : > { %v1316_v12 = vpop.f32.mrf.mxu1 }
 0x28d   : > { %v1275_v13 = vpop.f32.mrf.mxu0  ;;  %v1324_v6 = vadd.f32 %v1316_v12, %v1199_v40  ;;  %vm1739_vm0 = vcmp.ne.s32.totalorder %v1734_v8, 0  ;;  %vm1742_vm12 = vcmp.lt.s32.totalorder %v1734_v8, 0  ;;  %v1748_v21 = vadd.s32 18, %v1734_v8 }
 0x28e   : > { %v3221_v16 = vpop.f32.mrf.mxu1  ;;  %v1322_v43 = vadd.f32 %v1275_v13, %v1197_v31  ;;  %vm3891_vm7 = vmand %vm1742_vm12, %vm1739_vm0  ;;  %v2777_v31 = vrot.slane %v2767_v3, %v3632_v37 }
 0x28f   : > { %v1277_v19 = vpop.f32.mrf.mxu0  ;;  %v1759_v16 = vpop.permute.xlu0 %1758  ;;  %v1751_v39 = vsel %vm3891_vm7, %v1748_v21, %v1734_v8  ;;  %v2758_v8 = vld [vmem:[%s4154_s4] sm:$0xff] }
 0x290   : > { %v1319_v22 = vpop.f32.mrf.mxu1  ;;  %v1323_v52 = vadd.f32 %v1277_v19, %v1198_v33  ;;  %vm1754_vm12 = vcmp.lt.s32.totalorder %v1751_v39, 16 }
 0x291   : > { %v1279_v23 = vpop.f32.mrf.mxu0 }
 0x292   : > { %v3222_v24 = vpop.f32.mrf.mxu1  ;;  %v1749_v23 = vsel %vm3879_vm13, %v1746_v2, %v1712_v0 }
 0x293   : > { %v1280_v25 = vpop.f32.mrf.mxu0  ;;  %vm1752_vm13 = vcmp.lt.s32.totalorder %v1749_v23, 16 }
 0x294   : > { %v1441_v26 = vpop.f32.mrf.mxu1 }
 0x295   : > { %v1400_v27 = vpop.f32.mrf.mxu0  ;;  %v1449_v10 = vadd.f32 %v1441_v26, %v1324_v6 }
 0x296   : > { %v3227_v29 = vpop.f32.mrf.mxu1  ;;  %v1447_v58 = vadd.f32 %v1400_v27, %v1322_v43 }
 0x297   : > { %v1402_v36 = vpop.f32.mrf.mxu0  ;;  %v1750_v29 = vsel %vm3884_vm5, %v1747_v11, %v1723_v49  ;;  %vm1801_vm5 = vcmask 1043608   ;;  %v2770_v49 = vcombine.high %v2767_v3, %v2767_v3  ;;  %v1807_v11 = vld [vmem:[%s4153_s3] sm:$0xf] }
 0x298   : > { %v1444_v42 = vpop.f32.mrf.mxu1  ;;  %v1448_v5 = vadd.f32 %v1402_v36, %v1323_v52  ;;  %vm1753_vm0 = vcmp.lt.s32.totalorder %v1750_v29, 16  ;;  %vm1803_vm7 = vmor %vm1802_vm9, %vm1801_vm5  ;;  %vm2905_vm5 = vcmask 261248   ;;  %vm2910_vm9 = vcmask 392448  }
 0x299   : > { %v1404_v46 = vpop.f32.mrf.mxu0  ;;  %v2784_v6 = vrot.slane %v2770_v49, %v3632_v37 }
 0x29a   : > { %v3228_v53 = vpop.f32.mrf.mxu1 }
 0x29b   : > { %v1405_v56 = vpop.f32.mrf.mxu0 }
 0x29c   : > { %v1566_v30 = vpop.f32.mrf.mxu1 }
 0x29d   : > { %v1525_v63 = vpop.f32.mrf.mxu0  ;;  %v1574_v1 = vadd.f32 %v1566_v30, %v1449_v10 }
 0x29e   : > { %v3233_v41 = vpop.f32.mrf.mxu1  ;;  %v1572_v9 = vadd.f32 %v1525_v63, %v1447_v58 }
 0x29f   : > { %v1527_v7 = vpop.f32.mrf.mxu0  ;;  %v2785_v41 = vcombine.high %v2777_v31, %v2777_v31 }
 0x2a0   : > { %v1569_v50 = vpop.f32.mrf.mxu1  ;;  %v1573_v18 = vadd.f32 %v1527_v7, %v1448_v5  ;;  %v2890_v7 = vld [vmem:[%s4156_s6] sm:$0xff] }
 0x2a1   : > { %v1529_v57 = vpop.f32.mrf.mxu0 }
 0x2a2   : > { %v3234_v14 = vpop.f32.mrf.mxu1 }
 0x2a3   : > { %v1530_v60 = vpop.f32.mrf.mxu0  ;;  %v3099_v14 = vld [vmem:[%s4153_s3 + $0x4] sm:$0xf] }
 0x2a4   : > { %v1691_v12 = vpop.f32.mrf.mxu1 }
 0x2a5   : > { %v1699_v13 = vadd.f32 %v1691_v12, %v1574_v1  ;;  %v1650_v15 = vpop.f32.mrf.mxu0 }
 0x2a6   : > { %v1697_v19 = vadd.f32 %v1650_v15, %v1572_v9  ;;  %v3239_v20 = vpop.f32.mrf.mxu1 }
 0x2a7   : > { %v1652_v22 = vpop.f32.mrf.mxu0  ;;  %v1763_v26 = vadd.f32 %v1759_v16, %v1699_v13 }
 0x2a8   : > { %v1761_v25 = vadd.f32 %v1759_v16, %v1697_v19  ;;  %v1698_v27 = vadd.f32 %v1652_v22, %v1573_v18  ;;  %v1694_v28 = vpop.f32.mrf.mxu1  ;;  %v3109_v22 = vld [vmem:[%s4153_s3 + $0x8] sm:$0xf] }
 0x2a9   : > { %v1654_v32 = vpop.f32.mrf.mxu0  ;;  %v1766_v45 = vmax.f32 %v1763_v26, 0.0 }
 0x2aa   : > { %v1764_v35 = vmax.f32 %v1761_v25, 0.0  ;;  %v1762_v36 = vadd.f32 %v1759_v16, %v1698_v27  ;;  %v3240_v38 = vpop.f32.mrf.mxu1  ;;  %v3113_v32 = vld [vmem:[%s4153_s3 + $0xc] sm:$0xf] }
 0x2ab   : > { %v1655_v42 = vpop.f32.mrf.mxu0  ;;  %v1775_v53 = vsel %vm1754_vm12, %v1766_v45, 0.0 }
 0x2ac   : > { %v1765_v46 = vmax.f32 %v1762_v36, 0.0  ;;  %v1773_v47 = vsel %vm1752_vm13, %v1764_v35, 0.0  ;;  %v3147_v54 = vpack.c.bf16 %v1775_v53, %v1775_v53  ;;  %vm1828_vm13 = vcmask 64512  }
 0x2ae   : > { %v1774_v48 = vsel %vm1753_vm0, %v1765_v46, 0.0 }
 0x2af   : > { %v3146_v51 = vpack.c.bf16 %v1774_v48, %v1773_v47  ;;  %v3117_v47 = vld [vmem:[%s4153_s3 + $0x10] sm:$0xf] }
 0x2b1   : > { %1791 = vrot.lane.b32.xlu1 %v3146_v51, %s3474_s8 }
 0x2b5   : > { %1793 = vrot.lane.b32.xlu1 %v3147_v54, %s3474_s8  ;;  %s3500_s8 = smov 122  }
 0x323   : > { %v1792_v55 = vpop.permute.xlu1 %1791 }
 0x324   : > { %v1795_v56 = vrot.slane %v1792_v55, 4 }
 0x326   : > { %v1797_v59 = vsel %vm1796_vm6, %v1795_v56, %v1792_v55 }
 0x327   : > { %1804 = vst.msk [vmem:[#allocation3] sm:$0xff] %vm1803_vm7, %v1797_v59  ;;  %v1794_v61 = vpop.permute.xlu1 %1793 }
 0x328   : > { %v1798_v62 = vsel %vm1796_vm6, %v1795_v56, %v1794_v61  ;;  %v3121_v61 = vld [vmem:[%s4153_s3 + $0x14] sm:$0xf]  ;;  %vm2915_vm6 = vcmask 523648  }
 0x329   : > { %1806 = vst.msk [vmem:[#allocation3 + $0x8] sm:$0xf] %vm1805_vm4, %v1798_v62  ;;  %vm1832_vm4 = vcmask 1043456  }
 0x32e   : > { %v1808_v30 = vld [vmem:[#allocation3] sm:$0xff] }
 0x32f   : > { %v3100_v40 = vcombine.low %v1808_v30, %v1808_v30  ;;  %v3101_v63 = vcombine.high %v1808_v30, %v1808_v30 }
 0x330   : > { %v3401_v0 = vld [vmem:[#allocation3 + $0x8] ss:$0 sps:$4 sm:$0xff]  }
 0x331   : > { %1820 = vrot.lane.b32.xlu0 %v3100_v40, %s3480_s17  ;;  %1822 = vrot.lane.b32.xlu1 %v3101_v63, %s3480_s17  ;;  %v1933_v2 = vsel %vm1832_vm4, %v3401_v0, 0  ;;  %v1927_v5 = vsel %vm1832_vm4, %v3100_v40, 0 }
 0x335   : > { %2018 = vrot.lane.b32.xlu1 %v3100_v40, %s3492_s15  ;;  %1824 = vrot.lane.b32.xlu0 %v3401_v0, %s3480_s17  ;;  %s3501_s17 = smov 120  }
 0x339   : > { %2022 = vrot.lane.b32.xlu1 %v3401_v0, %s3492_s15  ;;  %2020 = vrot.lane.b32.xlu0 %v3101_v63, %s3492_s15 }
 0x33d   : > { %2126 = vrot.lane.b32.xlu1 %v3101_v63, %s3493_s19  ;;  %2124 = vrot.lane.b32.xlu0 %v3100_v40, %s3493_s19 }
 0x341   : > { %2230 = vrot.lane.b32.xlu1 %v3100_v40, %s3482_s20  ;;  %2128 = vrot.lane.b32.xlu0 %v3401_v0, %s3493_s19 }
 0x345   : > { %2234 = vrot.lane.b32.xlu1 %v3401_v0, %s3482_s20  ;;  %2232 = vrot.lane.b32.xlu0 %v3101_v63, %s3482_s20 }
 0x349   : > { %2338 = vrot.lane.b32.xlu1 %v3101_v63, %s3494_s21  ;;  %2336 = vrot.lane.b32.xlu0 %v3100_v40, %s3494_s21 }
 0x34d   : > { %2442 = vrot.lane.b32.xlu1 %v3100_v40, %s3495_s22  ;;  %2340 = vrot.lane.b32.xlu0 %v3401_v0, %s3494_s21 }
 0x351   : > { %2446 = vrot.lane.b32.xlu1 %v3401_v0, %s3495_s22  ;;  %2444 = vrot.lane.b32.xlu0 %v3101_v63, %s3495_s22  ;;  %s3504_s22 = smov 116  }
 0x355   : > { %2550 = vrot.lane.b32.xlu1 %v3101_v63, %s3479_s16  ;;  %2548 = vrot.lane.b32.xlu0 %v3100_v40, %s3479_s16 }
 0x359   : > { %2654 = vrot.lane.b32.xlu1 %v3100_v40, %s3496_s23  ;;  %2552 = vrot.lane.b32.xlu0 %v3401_v0, %s3479_s16  ;;  %s3503_s16 = smov 106  }
 0x35d   : > { %2658 = vrot.lane.b32.xlu1 %v3401_v0, %s3496_s23  ;;  %2656 = vrot.lane.b32.xlu0 %v3101_v63, %s3496_s23 }
 0x361   : > { %2788 = vrot.lane.b32.xlu1 %v2785_v41, %s3482_s20  ;;  %2786 = vrot.lane.b32.xlu0 %v2777_v31, %s3482_s20  ;;  %v3125_v31 = vld [vmem:[%s4153_s3 + $0x18] sm:$0xf] }
 0x365   : > { %2790 = vrot.lane.b32.xlu0 %v2784_v6, %s3482_s20  ;;  %2761 = vperm.xlu1 %3390, %v2758_v8   ;;  %s269_s20 = sand.u32 1, %s3455_s25  }
 0x366   : > { %s3059_s23 = sshll.u32 %s269_s20, 4 }
 0x367   : > { %s4075_s9 = scalar_lea.vmem [#allocation4], %s3059_s23  ;;  %s3505_s23 = smov 104  }
 0x369   : > { %2893 = vperm.xlu0 %3389, %v2890_v7  }
 0x3a3   : > { %v1821_v33 = vpop.permute.xlu0 %1820  ;;  %v1823_v43 = vpop.permute.xlu1 %1822 }
 0x3a4   : > { %v1826_v50 = vsel %vm419_vm10, %v1821_v33, %v1823_v43 }
 0x3a5   : > { %v1834_v58 = vsel %vm1832_vm4, %v1826_v50, 0 }
 0x3a7   : > { %v1825_v10 = vpop.permute.xlu0 %1824  ;;  %v2019_v57 = vpop.permute.xlu1 %2018 }
 0x3a8   : > { %v1827_v37 = vsel %vm419_vm10, %v1823_v43, %v1825_v10  ;;  %v1840_v52 = vsel %vm1832_vm4, %v1825_v10, 0  ;;  %vm4171_vm10 = vcmask 744448   ;;  %v3129_v43 = vld [vmem:[%s4153_s3 + $0x1c] sm:$0xf] }
 0x3a9   : > { %3103 = vmatprep.subr.msk.bf16.mxu0 %vm1832_vm4, %v1827_v37  ;;  %3242 = vmatpush3.bf16.msra.mxu1 %v1840_v52 }
 0x3aa   : > { %1857 = vmatpush1.bf16.msra.mxu0 %v1834_v58  ;;  %3247 = vmatprep.subr.bf16.mxu1 %v3490_v44 }
 0x3ab   : > { %v2021_v1 = vpop.permute.xlu0 %2020  ;;  %3106 = vmatprep.subr.msk.bf16.mxu0 %vm1832_vm4, %v3101_v63  ;;  %v2023_v60 = vpop.permute.xlu1 %2022 }
 0x3ac   : > { %3244 = vmatmul.mubr.msk.bf16.vlgmr.msra.gmra.mxu1 %vm1828_vm13, %v3099_v14  ;;  %v2025_v9 = vsel %vm851_vm14, %v2021_v1, %v2023_v60  ;;  %v2024_v13 = vsel %vm851_vm14, %v2019_v57, %v2021_v1  ;;  %v2036_v17 = vsel %vm1832_vm4, %v2023_v60, 0  ;;  %vm4172_vm14 = vmmov %vm4171_vm10 }
 0x3ad   : > { %3104 = vmatmul.mubr.msk.bf16.vlgmr.msra.gmra.mxu0 %vm1828_vm13, %v3099_v14  ;;  %3248 = vmatpush3.bf16.msra.mxu1 %v1933_v2  ;;  %v2030_v19 = vsel %vm1832_vm4, %v2024_v13, 0  ;;  %v3133_v14 = vld [vmem:[%s4153_s3 + $0x20] sm:$0xf] }
 0x3ae   : > { %1950 = vmatpush1.bf16.msra.mxu0 %v1927_v5  ;;  %3249 = vmatprep.mubr.msk.bf16.mxu1 %vm3491_vm11, %v3490_v44  ;;  %v2768_v5 = vld [vmem:[%s4155_s5] sm:$0xf] }
 0x3af   : > { %v2125_v12 = vpop.permute.xlu0 %2124  ;;  %3110 = vmatprep.subr.msk.bf16.mxu0 %vm1832_vm4, %v2025_v9  ;;  %v2127_v4 = vpop.permute.xlu1 %2126  ;;  %3253 = vmatprep.subr.bf16.mxu1 %v3490_v44 }
 0x3b0   : > { %1967 = vmatprep.mubr.bf16.mxu0 %v3473_v34  ;;  %v2130_v23 = vsel %vm976_vm15, %v2125_v12, %v2127_v4 }
 0x3b1   : > { %v2136_v26 = vsel %vm1832_vm4, %v2130_v23, 0 }
 0x3b3   : > { %v2129_v15 = vpop.permute.xlu0 %2128  ;;  %v2231_v16 = vpop.permute.xlu1 %2230 }
 0x3b4   : > { %v2131_v18 = vsel %vm976_vm15, %v2127_v4, %v2129_v15  ;;  %3250 = vmatmul.mubr.msk.bf16.vlgmr.msra.gmra.mxu1 %vm1828_vm13, %v1807_v11  ;;  %v2142_v25 = vsel %vm1832_vm4, %v2129_v15, 0  ;;  %vm4173_vm15 = vcmask 736256  }
 0x3b5   : > { %3254 = vmatpush3.bf16.msra.mxu1 %v2036_v17  ;;  %3107 = vmatmul.mubr.msk.bf16.vlgmr.msra.gmra.mxu0 %vm1828_vm13, %v1807_v11 }
 0x3b6   : > { %2053 = vmatpush1.bf16.msra.mxu0 %v2030_v19  ;;  %3255 = vmatprep.mubr.msk.bf16.mxu1 %vm3491_vm11, %v3490_v44 }
 0x3b7   : > { %3114 = vmatprep.subr.msk.bf16.mxu0 %vm1832_vm4, %v2131_v18  ;;  %v2233_v20 = vpop.permute.xlu0 %2232  ;;  %v2235_v21 = vpop.permute.xlu1 %2234  ;;  %3259 = vmatprep.subr.bf16.mxu1 %v3490_v44 }
 0x3b8   : > { %2070 = vmatprep.mubr.bf16.mxu0 %v3473_v34  ;;  %v2237_v28 = vsel %vm1101_vm1, %v2233_v20, %v2235_v21  ;;  %v2236_v35 = vsel %vm1101_vm1, %v2231_v16, %v2233_v20  ;;  %v2248_v38 = vsel %vm1832_vm4, %v2235_v21, 0 }
 0x3b9   : > { %v2242_v39 = vsel %vm1832_vm4, %v2236_v35, 0 }
 0x3bb   : > { %v2337_v24 = vpop.permute.xlu0 %2336  ;;  %v2339_v27 = vpop.permute.xlu1 %2338 }
 0x3bc   : > { %3256 = vmatmul.mubr.msk.bf16.vlgmr.msra.gmra.mxu1 %vm1828_vm13, %v3109_v22  ;;  %v2342_v48 = vsel %vm1226_vm2, %v2337_v24, %v2339_v27 }
 0x3bd   : > { %3260 = vmatpush3.bf16.msra.mxu1 %v2142_v25  ;;  %3111 = vmatmul.mubr.msk.bf16.vlgmr.msra.gmra.mxu0 %vm1828_vm13, %v3109_v22  ;;  %v2348_v54 = vsel %vm1832_vm4, %v2342_v48, 0 }
 0x3be   : > { %2159 = vmatpush1.bf16.msra.mxu0 %v2136_v26  ;;  %3261 = vmatprep.mubr.msk.bf16.mxu1 %vm3491_vm11, %v3490_v44 }
 0x3bf   : > { %3118 = vmatprep.subr.msk.bf16.mxu0 %vm1832_vm4, %v2237_v28  ;;  %v2341_v29 = vpop.permute.xlu0 %2340  ;;  %3265 = vmatprep.subr.bf16.mxu1 %v3490_v44  ;;  %v2443_v36 = vpop.permute.xlu1 %2442 }
 0x3c0   : > { %2176 = vmatprep.mubr.bf16.mxu0 %v3473_v34  ;;  %v2343_v45 = vsel %vm1226_vm2, %v2339_v27, %v2341_v29  ;;  %v2354_v53 = vsel %vm1832_vm4, %v2341_v29, 0  ;;  %vm4174_vm2 = vmmov %vm4173_vm15 }
 0x3c3   : > { %v2445_v42 = vpop.permute.xlu0 %2444  ;;  %v2447_v46 = vpop.permute.xlu1 %2446 }
 0x3c4   : > { %3262 = vmatmul.mubr.msk.bf16.vlgmr.msra.gmra.mxu1 %vm1828_vm13, %v3113_v32  ;;  %v2449_v55 = vsel %vm1351_vm3, %v2445_v42, %v2447_v46  ;;  %v2448_v62 = vsel %vm1351_vm3, %v2443_v36, %v2445_v42  ;;  %v2460_v30 = vsel %vm1832_vm4, %v2447_v46, 0  ;;  %vm4175_vm3 = vcmask 1041408  }
 0x3c5   : > { %3266 = vmatpush3.bf16.msra.mxu1 %v2248_v38  ;;  %3115 = vmatmul.mubr.msk.bf16.vlgmr.msra.gmra.mxu0 %vm1828_vm13, %v3113_v32  ;;  %v2454_v40 = vsel %vm1832_vm4, %v2448_v62, 0  ;;  %vm4176_vm0 = vmmov %vm4175_vm3 }
 0x3c6   : > { %2265 = vmatpush1.bf16.msra.mxu0 %v2242_v39  ;;  %3267 = vmatprep.mubr.msk.bf16.mxu1 %vm3491_vm11, %v3490_v44  ;;  %vm4177_vm12 = vmmov %vm4176_vm0 }
 0x3c7   : > { %3122 = vmatprep.subr.msk.bf16.mxu0 %vm1832_vm4, %v2343_v45  ;;  %3271 = vmatprep.subr.bf16.mxu1 %v3490_v44  ;;  %v2549_v51 = vpop.permute.xlu0 %2548  ;;  %v2551_v56 = vpop.permute.xlu1 %2550 }
 0x3c8   : > { %2282 = vmatprep.mubr.bf16.mxu0 %v3473_v34  ;;  %v2554_v41 = vsel %vm4172_vm14, %v2549_v51, %v2551_v56  ;;  %vm2973_vm14 = vcmask 818176  }
 0x3c9   : > { %v2560_v7 = vsel %vm1832_vm4, %v2554_v41, 0 }
 0x3cb   : > { %v2553_v59 = vpop.permute.xlu0 %2552  ;;  %v2655_v63 = vpop.permute.xlu1 %2654 }
 0x3cc   : > { %3268 = vmatmul.mubr.msk.bf16.vlgmr.msra.gmra.mxu1 %vm1828_vm13, %v3117_v47  ;;  %v2555_v0 = vsel %vm4171_vm10, %v2551_v56, %v2553_v59  ;;  %v2566_v6 = vsel %vm1832_vm4, %v2553_v59, 0  ;;  %vm2930_vm10 = vcmask 917248  }
 0x3cd   : > { %3272 = vmatpush3.bf16.msra.mxu1 %v2354_v53  ;;  %3119 = vmatmul.mubr.msk.bf16.vlgmr.msra.gmra.mxu0 %vm1828_vm13, %v3117_v47 }
 0x3ce   : > { %2371 = vmatpush1.bf16.msra.mxu0 %v2348_v54  ;;  %3273 = vmatprep.mubr.msk.bf16.mxu1 %vm3491_vm11, %v3490_v44 }
 0x3cf   : > { %3126 = vmatprep.subr.msk.bf16.mxu0 %vm1832_vm4, %v2449_v55  ;;  %3277 = vmatprep.subr.bf16.mxu1 %v3490_v44  ;;  %v2657_v3 = vpop.permute.xlu0 %2656  ;;  %v2659_v49 = vpop.permute.xlu1 %2658 }
 0x3d0   : > { %2388 = vmatprep.mubr.bf16.mxu0 %v3473_v34  ;;  %v2661_v33 = vsel %vm4173_vm15, %v2657_v3, %v2659_v49  ;;  %v2660_v50 = vsel %vm4174_vm2, %v2655_v63, %v2657_v3  ;;  %v2672_v57 = vsel %vm1832_vm4, %v2659_v49, 0  ;;  %vm2938_vm15 = vcmask 932864  }
 0x3d1   : > { %v2666_v37 = vsel %vm1832_vm4, %v2660_v50, 0  ;;  %vm2941_vm2 = vcmask 1048448  }
 0x3d3   : > { %v2787_v8 = vpop.permute.xlu0 %2786  ;;  %v2789_v52 = vpop.permute.xlu1 %2788 }
 0x3d4   : > { %3274 = vmatmul.mubr.msk.bf16.vlgmr.msra.gmra.mxu1 %vm1828_vm13, %v3121_v61  ;;  %v2792_v1 = vsel %vm1101_vm1, %v2787_v8, %v2789_v52 }
 0x3d5   : > { %3278 = vmatpush3.bf16.msra.mxu1 %v2460_v30  ;;  %3123 = vmatmul.mubr.msk.bf16.vlgmr.msra.gmra.mxu0 %vm1828_vm13, %v3121_v61  ;;  %v2798_v2 = vsel %vm4177_vm12, %v2792_v1, 0 }
 0x3d6   : > { %2477 = vmatpush1.bf16.msra.mxu0 %v2454_v40  ;;  %3279 = vmatprep.mubr.msk.bf16.mxu1 %vm3491_vm11, %v3490_v44 }
 0x3d7   : > { %3130 = vmatprep.subr.msk.bf16.mxu0 %vm1832_vm4, %v2555_v0  ;;  %3283 = vmatprep.subr.bf16.mxu1 %v3490_v44  ;;  %v2791_v10 = vpop.permute.xlu0 %2790 }
 0x3d8   : > { %2494 = vmatprep.mubr.bf16.mxu0 %v3473_v34  ;;  %v2793_v58 = vsel %vm1101_vm1, %v2789_v52, %v2791_v10  ;;  %v2804_v60 = vsel %vm4176_vm0, %v2791_v10, 0  ;;  %vm4178_vm1 = vcmask 31744  }
 0x3d9   : > { %vm4179_vm8 = vmmov %vm4178_vm1 }
 0x3dc   : > { %3280 = vmatmul.mubr.msk.bf16.vlgmr.msra.gmra.mxu1 %vm1828_vm13, %v3125_v31 }
 0x3dd   : > { %3284 = vmatpush3.bf16.msra.mxu1 %v2566_v6  ;;  %3127 = vmatmul.mubr.msk.bf16.vlgmr.msra.gmra.mxu0 %vm1828_vm13, %v3125_v31 }
 0x3de   : > { %2583 = vmatpush1.bf16.msra.mxu0 %v2560_v7  ;;  %3285 = vmatprep.mubr.msk.bf16.mxu1 %vm3491_vm11, %v3490_v44 }
 0x3df   : > { %3134 = vmatprep.subr.msk.bf16.mxu0 %vm1832_vm4, %v2661_v33  ;;  %3289 = vmatprep.subr.bf16.mxu1 %v3490_v44  ;;  %vm2920_vm4 = vcmask 654848  }
 0x3e0   : > { %2600 = vmatprep.mubr.bf16.mxu0 %v3473_v34 }
 0x3e4   : > { %3286 = vmatmul.mubr.msk.bf16.vlgmr.msra.gmra.mxu1 %vm1828_vm13, %v3129_v43 }
 0x3e5   : > { %3290 = vmatpush3.bf16.msra.mxu1 %v2672_v57  ;;  %3131 = vmatmul.mubr.msk.bf16.vlgmr.msra.gmra.mxu0 %vm1828_vm13, %v3129_v43 }
 0x3e6   : > { %2689 = vmatpush1.bf16.msra.mxu0 %v2666_v37  ;;  %3291 = vmatprep.mubr.msk.bf16.mxu1 %vm3491_vm11, %v3490_v44 }
 0x3e7   : > { %3137 = vmatprep.subr.msk.bf16.mxu0 %vm4175_vm3, %v2793_v58  ;;  %3295 = vmatprep.subr.bf16.mxu1 %v3490_v44 }
 0x3e8   : > { %2706 = vmatprep.mubr.bf16.mxu0 %v3473_v34 }
 0x3ec   : > { %3292 = vmatmul.mubr.msk.bf16.vlgmr.msra.gmra.mxu1 %vm1828_vm13, %v3133_v14 }
 0x3ed   : > { %3296 = vmatpush3.bf16.msra.mxu1 %v2804_v60  ;;  %3135 = vmatmul.mubr.msk.bf16.vlgmr.msra.gmra.mxu0 %vm1828_vm13, %v3133_v14  ;;  %vm2925_vm13 = vcmask 786048  }
 0x3ee   : > { %2821 = vmatpush1.bf16.msra.mxu0 %v2798_v2  ;;  %3297 = vmatprep.mubr.msk.bf16.mxu1 %vm3491_vm11, %v3490_v44  ;;  %vm4180_vm11 = vcmask 130048  }
 0x3ef   : > { %2838 = vmatprep.mubr.bf16.mxu0 %v3473_v34  ;;  %vm4181_vm7 = vmmov %vm4180_vm11 }
 0x3f4   : > { %3298 = vmatmul.mubr.msk.bf16.vlgmr.msra.gmra.mxu1 %vm4178_vm1, %v2768_v5 }
 0x3f5   : > { %3138 = vmatmul.mubr.msk.bf16.vlgmr.msra.gmra.mxu0 %vm4179_vm8, %v2768_v5 }
 0x46c   : > { %v1917_v9 = vpop.f32.mrf.mxu1 }
 0x46d   : > { %v1876_v12 = vpop.f32.mrf.mxu0 }
 0x46e   : > { %v3245_v4 = vpop.f32.mrf.mxu1 }
 0x46f   : > { %v1878_v11 = vpop.f32.mrf.mxu0 }
 0x470   : > { %v1920_v13 = vpop.f32.mrf.mxu1 }
 0x471   : > { %v1880_v15 = vpop.f32.mrf.mxu0 }
 0x472   : > { %v3246_v16 = vpop.f32.mrf.mxu1 }
 0x473   : > { %v1881_v17 = vpop.f32.mrf.mxu0 }
 0x474   : > { %v2010_v18 = vpop.f32.mrf.mxu1 }
 0x475   : > { %v1969_v44 = vpop.f32.mrf.mxu0  ;;  %v2011_v50 = vadd.f32 %v2010_v18, %v1917_v9 }
 0x476   : > { %v3251_v19 = vpop.f32.mrf.mxu1  ;;  %v1970_v57 = vadd.f32 %v1969_v44, %v1876_v12 }
 0x477   : > { %v1971_v34 = vpop.f32.mrf.mxu0 }
 0x478   : > { %v2013_v20 = vpop.f32.mrf.mxu1  ;;  %v1972_v60 = vadd.f32 %v1971_v34, %v1878_v11 }
 0x479   : > { %v1973_v21 = vpop.f32.mrf.mxu0 }
 0x47a   : > { %v3252_v22 = vpop.f32.mrf.mxu1 }
 0x47b   : > { %v1974_v23 = vpop.f32.mrf.mxu0 }
 0x47c   : > { %v2113_v24 = vpop.f32.mrf.mxu1 }
 0x47d   : > { %v2072_v25 = vpop.f32.mrf.mxu0  ;;  %v2121_v52 = vadd.f32 %v2113_v24, %v2011_v50 }
 0x47e   : > { %v3257_v26 = vpop.f32.mrf.mxu1  ;;  %v2119_v14 = vadd.f32 %v2072_v25, %v1970_v57 }
 0x47f   : > { %v2074_v27 = vpop.f32.mrf.mxu0 }
 0x480   : > { %v2116_v28 = vpop.f32.mrf.mxu1  ;;  %v2120_v15 = vadd.f32 %v2074_v27, %v1972_v60 }
 0x481   : > { %v2076_v29 = vpop.f32.mrf.mxu0 }
 0x482   : > { %v3258_v32 = vpop.f32.mrf.mxu1 }
 0x483   : > { %v2077_v35 = vpop.f32.mrf.mxu0 }
 0x484   : > { %v2219_v36 = vpop.f32.mrf.mxu1 }
 0x485   : > { %v2178_v38 = vpop.f32.mrf.mxu0  ;;  %v2227_v2 = vadd.f32 %v2219_v36, %v2121_v52 }
 0x486   : > { %v3263_v39 = vpop.f32.mrf.mxu1  ;;  %v2225_v4 = vadd.f32 %v2178_v38, %v2119_v14 }
 0x487   : > { %v2180_v42 = vpop.f32.mrf.mxu0  ;;  %v2762_v39 = vpop.permute.xlu1 %2761 }
 0x488   : > { %v2222_v45 = vpop.f32.mrf.mxu1  ;;  %v2226_v21 = vadd.f32 %v2180_v42, %v2120_v15 }
 0x489   : > { %v2182_v46 = vpop.f32.mrf.mxu0 }
 0x48a   : > { %v3264_v47 = vpop.f32.mrf.mxu1 }
 0x48b   : > { %v2183_v48 = vpop.f32.mrf.mxu0 }
 0x48c   : > { %v2325_v51 = vpop.f32.mrf.mxu1 }
 0x48d   : > { %v2284_v53 = vpop.f32.mrf.mxu0  ;;  %v2333_v16 = vadd.f32 %v2325_v51, %v2227_v2 }
 0x48e   : > { %v3269_v54 = vpop.f32.mrf.mxu1  ;;  %v2331_v19 = vadd.f32 %v2284_v53, %v2225_v4 }
 0x48f   : > { %v2286_v55 = vpop.f32.mrf.mxu0 }
 0x490   : > { %v2328_v56 = vpop.f32.mrf.mxu1  ;;  %v2332_v44 = vadd.f32 %v2286_v55, %v2226_v21 }
 0x491   : > { %v2288_v59 = vpop.f32.mrf.mxu0 }
 0x492   : > { %v3270_v61 = vpop.f32.mrf.mxu1 }
 0x493   : > { %v2289_v62 = vpop.f32.mrf.mxu0  ;;  %v2894_v61 = vpop.permute.xlu0 %2893 }
 0x494   : > { %v2431_v30 = vpop.f32.mrf.mxu1 }
 0x495   : > { %v2390_v40 = vpop.f32.mrf.mxu0  ;;  %v2439_v22 = vadd.f32 %v2431_v30, %v2333_v16 }
 0x496   : > { %v3275_v63 = vpop.f32.mrf.mxu1  ;;  %v2437_v18 = vadd.f32 %v2390_v40, %v2331_v19 }
 0x497   : > { %v2392_v0 = vpop.f32.mrf.mxu0 }
 0x498   : > { %v2434_v3 = vpop.f32.mrf.mxu1  ;;  %v2438_v11 = vadd.f32 %v2392_v0, %v2332_v44 }
 0x499   : > { %v2394_v31 = vpop.f32.mrf.mxu0 }
 0x49a   : > { %v3276_v41 = vpop.f32.mrf.mxu1 }
 0x49b   : > { %v2395_v49 = vpop.f32.mrf.mxu0 }
 0x49c   : > { %v2537_v6 = vpop.f32.mrf.mxu1 }
 0x49d   : > { %v2496_v7 = vpop.f32.mrf.mxu0  ;;  %v2545_v23 = vadd.f32 %v2537_v6, %v2439_v22 }
 0x49e   : > { %v3281_v8 = vpop.f32.mrf.mxu1  ;;  %v2543_v25 = vadd.f32 %v2496_v7, %v2437_v18 }
 0x49f   : > { %v2498_v33 = vpop.f32.mrf.mxu0 }
 0x4a0   : > { %v2540_v43 = vpop.f32.mrf.mxu1  ;;  %v2544_v32 = vadd.f32 %v2498_v33, %v2438_v11 }
 0x4a1   : > { %v2500_v10 = vpop.f32.mrf.mxu0 }
 0x4a2   : > { %v3282_v37 = vpop.f32.mrf.mxu1 }
 0x4a3   : > { %v2501_v58 = vpop.f32.mrf.mxu0 }
 0x4a4   : > { %v2643_v1 = vpop.f32.mrf.mxu1 }
 0x4a5   : > { %v2602_v5 = vpop.f32.mrf.mxu0  ;;  %v2651_v34 = vadd.f32 %v2643_v1, %v2545_v23 }
 0x4a6   : > { %v3287_v13 = vpop.f32.mrf.mxu1  ;;  %v2649_v29 = vadd.f32 %v2602_v5, %v2543_v25 }
 0x4a7   : > { %v2604_v17 = vpop.f32.mrf.mxu0 }
 0x4a8   : > { %v2646_v20 = vpop.f32.mrf.mxu1  ;;  %v2650_v45 = vadd.f32 %v2604_v17, %v2544_v32 }
 0x4a9   : > { %v2606_v9 = vpop.f32.mrf.mxu0 }
 0x4aa   : > { %v3288_v12 = vpop.f32.mrf.mxu1 }
 0x4ab   : > { %v2607_v24 = vpop.f32.mrf.mxu0 }
 0x4ac   : > { %v2749_v26 = vpop.f32.mrf.mxu1 }
 0x4ad   : > { %v2708_v28 = vpop.f32.mrf.mxu0  ;;  %v2757_v35 = vadd.f32 %v2749_v26, %v2651_v34 }
 0x4ae   : > { %v3293_v27 = vpop.f32.mrf.mxu1  ;;  %v2755_v38 = vadd.f32 %v2708_v28, %v2649_v29 }
 0x4af   : > { %v2710_v36 = vpop.f32.mrf.mxu0  ;;  %v2766_v53 = vadd.f32 %v2762_v39, %v2757_v35 }
 0x4b0   : > { %v2752_v42 = vpop.f32.mrf.mxu1  ;;  %v2756_v48 = vadd.f32 %v2710_v36, %v2650_v45  ;;  %v2764_v55 = vadd.f32 %v2762_v39, %v2755_v38 }
 0x4b1   : > { %v2712_v46 = vpop.f32.mrf.mxu0 }
 0x4b2   : > { %v3294_v47 = vpop.f32.mrf.mxu1  ;;  %v2765_v63 = vadd.f32 %v2762_v39, %v2756_v48 }
 0x4b3   : > { %v2713_v51 = vpop.f32.mrf.mxu0 }
 0x4b4   : > { %v2881_v54 = vpop.f32.mrf.mxu1 }
 0x4b5   : > { %v2889_v56 = vadd.f32 %v2881_v54, %v2766_v53  ;;  %v2840_v59 = vpop.f32.mrf.mxu0 }
 0x4b6   : > { %v2887_v62 = vadd.f32 %v2840_v59, %v2764_v55  ;;  %v3299_v30 = vpop.f32.mrf.mxu1 }
 0x4b7   : > { %v2898_v40 = vadd.f32 %v2894_v61, %v2889_v56  ;;  %v2842_v0 = vpop.f32.mrf.mxu0 }
 0x4b8   : > { %v2896_v3 = vadd.f32 %v2894_v61, %v2887_v62  ;;  %v2884_v31 = vpop.f32.mrf.mxu1  ;;  %v2888_v49 = vadd.f32 %v2842_v0, %v2765_v63 }
 0x4b9   : > { %v2967_v41 = vmax.f32 %v2898_v40, 0.0  ;;  %v2844_v6 = vpop.f32.mrf.mxu0 }
 0x4ba   : > { %v2899_v7 = vmax.f32 %v2896_v3, 0.0  ;;  %v3300_v8 = vpop.f32.mrf.mxu1  ;;  %v2897_v43 = vadd.f32 %v2894_v61, %v2888_v49 }
 0x4bb   : > { %2971 = vrot.lane.b32.xlu1 %v2967_v41, %s3497_s29  ;;  %v2845_v33 = vpop.f32.mrf.mxu0 }
 0x4bc   : > { %2902 = vrot.lane.b32.xlu0 %v2899_v7, %s3492_s15  ;;  %2900 = vst.msk [vmem:[%s4075_s9] sm:$0xff] %vm4180_vm11, %v2899_v7  ;;  %v2932_v50 = vmax.f32 %v2897_v43, 0.0  ;;  %s3502_s15 = smov 118  }
 0x4bf   : > { %2934 = vrot.lane.b32.xlu1 %v2899_v7, %s3498_s13 }
 0x4c0   : > { %2907 = vrot.lane.b32.xlu0 %v2899_v7, %s3499_s14 }
 0x4c3   : > { %2943 = vrot.lane.b32.xlu1 %v2932_v50, %s3465_s18  ;;  %s3506_s18 = smov 102  }
 0x4c4   : > { %2912 = vrot.lane.b32.xlu0 %v2899_v7, %s3500_s8 }
 0x4c7   : > { %2947 = vrot.lane.b32.xlu1 %v2932_v50, %s3493_s19  ;;  %s3507_s19 = smov 98  }
 0x4c8   : > { %2917 = vrot.lane.b32.xlu0 %v2899_v7, %s3501_s17  ;;  %s2982_s17 = scalar_lea.sflag [#allocation5], %s269_s20 }
 0x4cb   : > { %2951 = vrot.lane.b32.xlu1 %v2932_v50, %s3494_s21  ;;  %s3148_s21 = sshll.u32 %s3570_s28, 8 }
 0x4cc   : > { %2922 = vrot.lane.b32.xlu0 %v2899_v7, %s3502_s15  ;;  %s4112_s8 = scalar_lea.hbm %s4157_s7, %s3148_s21  ;;  %s3508_s15 = smov [#allocation4]  }
 0x4cf   : > { %2955 = vrot.lane.b32.xlu1 %v2932_v50, %s3503_s16  ;;  %s3407_s16 = sshll.u32 %s3508_s15, 4  ;;  %s3408_s16 = int_to_ptr.vmem [resolvable:$false] %s3407_s16 }
 0x4d0   : > { %2927 = vrot.lane.b32.xlu0 %v2899_v7, %s3504_s22  ;;  %s3409_s22 = scalar_lea.vmem %s3408_s16, 512 }
 0x4d3   : > { %2959 = vrot.lane.b32.xlu1 %v2932_v50, %s3505_s23 }
 0x4d4   : > { %2969 = vrot.lane.b32.xlu0 %v2932_v50, %s3497_s29  ;;  %s2996_s29 = sshll.u32 %s4075_s9, 4  ;;  %s2997_s29 = int_to_ptr.vmem [resolvable:$true] %s2996_s29 }
 0x4d5   : > { %s3403_s28 = scalar_lea.vmem %s2997_s29, 256  ;;  %p3410_p0 = scmp.lt.s32.totalorder %s2997_s29, %s3408_s16 }
 0x4d6   : > { %p3404_p11 = scmp.ne.s32.totalorder %s2997_s29, %s3403_s28  ;;  %p3411_p1 = scmp.lt.s32.totalorder %s3409_s22, %s3403_s28 }
 0x4d7   : > { %2963 = vrot.lane.b32.xlu1 %v2932_v50, %s3506_s18 }
 0x4d8   : > { %2936 = vrot.lane.b32.xlu0 %v2932_v50, %s3498_s13  ;;  %p3405_p12 = pnand %p3404_p11, %p3587_p5  ;;  %p3412_p2 = por %p3411_p1, %p3410_p0 }
 0x4da   : > { %p3406_p13 = pneg %p3405_p12 }
 0x4db   : > { %2977 = vrot.lane.b32.xlu1 %v2967_v41, %s3507_s19 }
 0x4dc   : > { %p3413_p3 = pnand %p3412_p2, %p3406_p13 }
 0x52d   : > { %v2972_v10 = vpop.permute.xlu1 %2971 }
 0x52e   : > { %v2903_v57 = vpop.permute.xlu0 %2902 }
 0x52f   : > { %2906 = vst.msk [vmem:[%s4075_s9] sm:$0xff] %vm2905_vm5, %v2903_v57 }
 0x531   : > { %v2935_v37 = vpop.permute.xlu1 %2934 }
 0x532   : > { %v2908_v52 = vpop.permute.xlu0 %2907 }
 0x533   : > { %2911 = vst.msk [vmem:[%s4075_s9] sm:$0xff] %vm2910_vm9, %v2908_v52 }
 0x535   : > { %v2944_v58 = vpop.permute.xlu1 %2943 }
 0x536   : > { %2946 = vst.msk [vmem:[%s4075_s9 + $0x8] sm:$0xff] %vm4181_vm7, %v2944_v58  ;;  %v2913_v14 = vpop.permute.xlu0 %2912 }
 0x537   : > { %2916 = vst.msk [vmem:[%s4075_s9] sm:$0xff] %vm2915_vm6, %v2913_v14 }
 0x539   : > { %v2948_v1 = vpop.permute.xlu1 %2947 }
 0x53a   : > { %2950 = vst.msk [vmem:[%s4075_s9 + $0x8] sm:$0xff] %vm2905_vm5, %v2948_v1  ;;  %v2918_v60 = vpop.permute.xlu0 %2917 }
 0x53b   : > { %2921 = vst.msk [vmem:[%s4075_s9] sm:$0xff] %vm2920_vm4, %v2918_v60 }
 0x53d   : > { %v2952_v2 = vpop.permute.xlu1 %2951 }
 0x53e   : > { %2954 = vst.msk [vmem:[%s4075_s9 + $0x8] sm:$0xff] %vm2910_vm9, %v2952_v2  ;;  %v2923_v5 = vpop.permute.xlu0 %2922 }
 0x53f   : > { %2926 = vst.msk [vmem:[%s4075_s9] sm:$0xff] %vm2925_vm13, %v2923_v5 }
 0x541   : > { %v2956_v4 = vpop.permute.xlu1 %2955 }
 0x542   : > { %2958 = vst.msk [vmem:[%s4075_s9 + $0x8] sm:$0xff] %vm2915_vm6, %v2956_v4  ;;  %v2928_v13 = vpop.permute.xlu0 %2927 }
 0x543   : > { %2931 = vst.msk [vmem:[%s4075_s9] sm:$0xff] %vm2930_vm10, %v2928_v13 }
 0x545   : > { %v2960_v15 = vpop.permute.xlu1 %2959 }
 0x546   : > { %2962 = vst.msk [vmem:[%s4075_s9 + $0x8] sm:$0xff] %vm2920_vm4, %v2960_v15  ;;  %v2970_v16 = vpop.permute.xlu0 %2969 }
 0x547   : > { %v2974_v19 = vsel %vm2973_vm14, %v2970_v16, %v2972_v10 }
 0x549   : > { %v2964_v17 = vpop.permute.xlu1 %2963 }
 0x54a   : > { %2966 = vst.msk [vmem:[%s4075_s9 + $0x8] sm:$0xff] %vm2925_vm13, %v2964_v17  ;;  %v2937_v20 = vpop.permute.xlu0 %2936 }
 0x54b   : > { %2976 = vst.msk [vmem:[%s4075_s9 + $0x8] sm:$0xff] %vm2930_vm10, %v2974_v19  ;;  %v2939_v21 = vsel %vm2938_vm15, %v2935_v37, %v2937_v20 }
 0x54c   : > { %2942 = vst.msk [vmem:[%s4075_s9] sm:$0xff] %vm2941_vm2, %v2939_v21 }
 0x54d   : > { %v2978_v22 = vpop.permute.xlu1 %2977 }
 0x54e   : > { %2980 = vst.msk [vmem:[%s4075_s9 + $0x8] sm:$0xff] %vm2941_vm2, %v2978_v22 }
 0x54f   : > { %3416 = shalt.err (!%p3413_p3)
}
 0x550   : > { %s3417_s9 = scalar_lea.hbm %s4112_s8, 256  ;;  %s3421_s18 = scalar_lea.hbm %s4157_s7, 512 }
 0x551   : > { %p3418_p4 = scmp.ne.s32.totalorder %s4112_s8, %s3417_s9  ;;  %p3422_p9 = scmp.lt.s32.totalorder %s4112_s8, %s4157_s7 }
 0x552   : > { %p3423_p10 = scmp.lt.s32.totalorder %s3421_s18, %s3417_s9 }
 0x553   : > { %p3419_p7 = pnand %p3418_p4, %p3587_p5 }
 0x554   : > { %p3424_p11 = por %p3423_p10, %p3422_p9 }
 0x555   : > { %p3420_p8 = pneg %p3419_p7 }
 0x557   : > { %p3425_p12 = pnand %p3424_p11, %p3420_p8 }
 0x559   : > { %3428 = shalt.err (!%p3425_p12)
}
 0x55a   : > { %3307 = dma.vmem_to_hbm [thread:$0]  (%p3587_p5), %s2997_s29, 256, %s4112_s8, %s2982_s17  }
 0x55b PF: > { %p3313_p13 = scmp.ge.s32.totalorder %s3463_s27, 2  ;;  %s3008_s13 = sand.u32 1, %s3451_s24  }
 0x55c   : > { %s3009_s14 = scalar_lea.sflag [#allocation5], %s3008_s13 }
 0x55d   : > { %p3310_p0 = pnand %p3313_p13, %p3591_p6 }
 0x55f   : > { %p3311_p1 = pneg %p3310_p0 }
 0x561   : > { %3446 = dma.done.wait (%p3311_p1), %s3009_s14, 256  }
 0x562   : > { %3448 = vsyncadd (%p3311_p1), %s3009_s14, 4294967040  ;;  %p17_p2 = scmp.ge.s32.totalorder %s3574_s30, 4   ;;  %s4182_s24 = smov %s3455_s25 }
 0x563   : > { %s4183_s25 = smov %s3459_s26  ;;  %s4184_s26 = smov %s3585_s10 }
 0x564   : > { %s4185_s27 = smov %s3574_s30  ;;  %19 = sbr.rel (!%p17_p2) target bundleno = 3 (0x3), region = 99 }
 0x569   :  { %3014 = vsyncpa [#allocation5], 1 }
 0x56a   :  { %3016 = vsyncpa [#allocation5 + $0x1], 1 }

</bundles_post_ra>
